<compile_context>
chip_gen: v7x
topology: tpu7x:2x2x1
jax: 0.10.0
libtpu: 0.0.40
codegen_flags: <defaults>
</compile_context>

<pallas_src>
import functools

import jax
import jax.numpy as jnp
from jax import lax
from jax.experimental import pallas as pl
from jax.experimental.pallas import tpu as pltpu

_MARGIN = 128  # lane-tile-aligned column where the interior pixels of h live


def _resblock_kernel(x_ref, w01_ref, b01_ref, w2_ref, b2_ref, w3_ref, b3_ref,
                     out_ref, hpad_ref, *, H, W):
    Wp = W + 2                      # padded row width
    Lv = H * Wp                     # valid-ish columns per image (2 wrap cols/row)
    Lp = (H + 3) * Wp               # per-image lane stride (1 top + 2 bottom pad rows)
    Cb = out_ref.shape[0]
    Lacc = out_ref.shape[1]         # conv/accumulator lane width (covers nb images)
    Lh = hpad_ref.shape[1]
    taps = tuple(di * Wp + dj for di in range(3) for dj in range(3))
    c0 = _MARGIN - (Wp + 1)         # hpad column holding padded-spatial index 0

    def conv(src_ref, base, w_ref, b_ref, leaky):
        # 3x3 conv as 9 accumulated (Cout,Cin)@(Cin,Lacc) matmuls; every tap
        # read is a constant lane-offset slice of the padded source slab.
        cout = w_ref.shape[1]
        acc = jnp.zeros((cout, Lacc), jnp.float32)
        for t, off in enumerate(taps):
            acc = acc + jnp.dot(w_ref[t], src_ref[:, pl.ds(base + off, Lacc)],
                                preferred_element_type=jnp.float32)
        acc = acc + b_ref[...]                           # (Cout,1) broadcast
        if leaky:
            acc = jnp.where(acc >= 0, acc, 0.2 * acc)    # LeakyReLU(0.2)
        return acc                                       # (Cout, Lacc) f32

    # A column c of the accumulator is a real pixel iff, within its image
    # (u = c % Lp), it is inside the H rows (u < Lv) and not a wrap column.
    col = lax.broadcasted_iota(jnp.int32, (Cb, Lacc), 1)
    u = col % Lp
    valid = (u < Lv) & ((u % Wp) < W)

    def store_padded(h):
        # Zero wrap columns / inter-image garbage zones and drop h into the
        # hpad scratch.  The constant shift Wp+1 (pixel (0,0) -> padded (1,1))
        # is folded into c0 so the store starts at lane _MARGIN (aligned).
        hpad_ref[:, pl.ds(_MARGIN, Lacc)] = jnp.where(valid, h, 0.0)

    # Zero only the border columns the masked store never touches (the interior
    # is fully overwritten every step) -- review item: no full-scratch re-zero.
    hpad_ref[:, pl.ds(0, _MARGIN)] = jnp.zeros((Cb, _MARGIN), jnp.float32)
    tail = Lh - _MARGIN - Lacc
    hpad_ref[:, pl.ds(_MARGIN + Lacc, tail)] = jnp.zeros((Cb, tail), jnp.float32)

    # Fused conv_in + conv1 over x: rows [:Cb] = conv_in, rows [Cb:] = conv1.
    acc01 = conv(x_ref, 0, w01_ref, b01_ref, True)       # (2*Cb, Lacc)
    x_branch = acc01[:Cb, :]                             # LeakyReLU(conv_in(x))
    store_padded(acc01[Cb:, :])                          # LeakyReLU(conv1(x))

    # conv2 -> lrelu -> conv3, then residual add.
    store_padded(conv(hpad_ref, c0, w2_ref, b2_ref, True))
    y = conv(hpad_ref, c0, w3_ref, b3_ref, False) + x_branch
    out_ref[...] = y.astype(out_ref.dtype)


def prepare_params(params):
    """One-time weight re-layout (call at init, NOT per forward).

    PyTorch (Cout, Cin, 3, 3) -> tap-major (9, Cout, Cin); bias -> (Cout, 1);
    conv_in and conv1 concatenated along Cout for the fused first stage.
    """
    (w_in, b_in), (w1, b1), (w2, b2), (w3, b3) = params

    def wt(w):
        co, ci = w.shape[0], w.shape[1]
        return jnp.transpose(w.reshape(co, ci, 9), (2, 0, 1))

    def bt(b):
        return b.reshape(-1, 1)

    w01 = jnp.concatenate([wt(w_in), wt(w1)], axis=1)     # (9, 2*Cb, Cin)
    b01 = jnp.concatenate([bt(b_in), bt(b1)], axis=0)     # (2*Cb, 1)
    return (w01, b01, wt(w2), bt(b2), wt(w3), bt(b3))


def _pick_images_per_step(n):
    for nb in (8, 4, 2, 1):
        if n % nb == 0:
            return nb
    return 1


def res_block(x_nchw, prepped, *, images_per_step=None):
    """ResBlock forward.  x_nchw: (N, Cin, H, W) -> (N, Cb, H, W)."""
    w01, b01, w2, b2, w3, b3 = prepped
    N, Cin, H, W = x_nchw.shape
    Cb = w2.shape[1]
    Wp = W + 2
    Lv = H * Wp
    Lp = (H + 3) * Wp
    max_off = 2 * Wp + 2                         # largest 3x3 tap lane offset

    nb = images_per_step or _pick_images_per_step(N)
    assert N % nb == 0, "batch must be divisible by images_per_step"
    G = N // nb

    # Accumulator / output lane width: all valid columns of nb images at stride
    # Lp, rounded up to a 128-lane multiple when the source slab has headroom
    # (review item: lane-dense, unmasked output stores).
    Lslab = (nb - 1) * Lp + Lv
    Lacc = -(-Lslab // 128) * 128
    if Lacc + max_off > nb * Lp:
        Lacc = Lslab
    Lh = _MARGIN + nb * Lp                       # hpad scratch width

    # Pad once (shared by fused conv_in/conv1), lay out channel-major with
    # per-image lane stride Lp: (G, Cin, nb*Lp).
    xp = jnp.pad(x_nchw, ((0, 0), (0, 0), (1, 2), (1, 1)))          # (N,Cin,H+3,Wp)
    xp = jnp.moveaxis(xp.reshape(G, nb, Cin, Lp), 1, 2).reshape(G, Cin, nb * Lp)

    kernel = functools.partial(_resblock_kernel, H=H, W=W)

    def fullspec(shape):
        return pl.BlockSpec(shape, lambda g: (0,) * len(shape))     # resident

    y = pl.pallas_call(
        kernel,
        out_shape=jax.ShapeDtypeStruct((G, Cb, Lacc), x_nchw.dtype),
        grid_spec=pltpu.PrefetchScalarGridSpec(
            num_scalar_prefetch=0,
            grid=(G,),
            in_specs=[
                pl.BlockSpec((None, Cin, nb * Lp), lambda g: (g, 0, 0)),  # x slab
                fullspec(w01.shape), fullspec(b01.shape),   # fused conv_in+conv1
                fullspec(w2.shape), fullspec(b2.shape),     # conv2
                fullspec(w3.shape), fullspec(b3.shape),     # conv3
            ],
            out_specs=pl.BlockSpec((None, Cb, Lacc), lambda g: (g, 0, 0)),
            scratch_shapes=[pltpu.VMEM((Cb, Lh), jnp.float32)],
        ),
        compiler_params=pltpu.CompilerParams(
            dimension_semantics=("parallel",),
        ),
    )(xp, w01, b01, w2, b2, w3, b3)

    # De-pad: drop wrap columns / garbage rows and restore (N, Cb, H, W).
    # (Negligible at this size; a real pipeline would keep the padded layout.)
    y = jnp.pad(y, ((0, 0), (0, 0), (0, nb * Lp - Lacc)))           # (G,Cb,nb*Lp)
    y = y.reshape(G, Cb, nb, H + 3, Wp)[:, :, :, :H, :W]
    return jnp.moveaxis(y, 2, 1).reshape(N, Cb, H, W)


# ----------------------------- reference (plain JAX) -----------------------------
def _conv3x3_ref(x, w, b):
    y = lax.conv_general_dilated(x, w, window_strides=(1, 1),
                                 padding=((1, 1), (1, 1)),
                                 dimension_numbers=('NCHW', 'OIHW', 'NCHW'))
    return y + b.reshape(1, -1, 1, 1)


def res_block_ref(x, params):
    (w_in, b_in), (w1, b1), (w2, b2), (w3, b3) = params
    lrelu = lambda t: jnp.where(t >= 0, t, 0.2 * t)
    x_branch = lrelu(_conv3x3_ref(x, w_in, b_in))
    h = lrelu(_conv3x3_ref(x, w1, b1))
    h = lrelu(_conv3x3_ref(h, w2, b2))
    return _conv3x3_ref(h, w3, b3) + x_branch


# ----------------------------- parameter init -----------------------------
def init_params(key, in_channel, base_channel):
    def conv_params(k, cin, cout):
        kw, kb = jax.random.split(k)
        scale = 1.0 / jnp.sqrt(cin * 9.0)
        w = jax.random.uniform(kw, (cout, cin, 3, 3), jnp.float32, -scale, scale)
        b = jax.random.uniform(kb, (cout,), jnp.float32, -scale, scale)
        return w, b

    k0, k1, k2, k3 = jax.random.split(key, 4)
    return (
        conv_params(k0, in_channel, base_channel),    # conv_in
        conv_params(k1, in_channel, base_channel),    # conv_block[0]
        conv_params(k2, base_channel, base_channel),  # conv_block[2]
        conv_params(k3, base_channel, base_channel),  # conv_block[4]
    )


if __name__ == "__main__":
    in_channel, base_channel = 4, 8
    N, H, W = 2, 16, 16

    key = jax.random.PRNGKey(0)
    kx, kp = jax.random.split(key)

    # PyTorch-style NCHW input.
    x = jax.random.normal(kx, (N, in_channel, H, W), jnp.float32)
    params = init_params(kp, in_channel, base_channel)

    prepped = prepare_params(params)          # weight re-layout: once, at init
    fwd = jax.jit(res_block)

    out = jax.block_until_ready(fwd(x, prepped))
    ref = jax.block_until_ready(res_block_ref(x, params))

    assert out.shape == (N, base_channel, H, W)
    assert jnp.allclose(out, ref, rtol=1e-4, atol=1e-4), (
        float(jnp.max(jnp.abs(out - ref))))

    print("KERNEL_OK")
</pallas_src>

<mosaic_0001>
module attributes {stable_mosaic.version = 11 : i64} {
  func.func @_resblock_kernel(%arg0: i32, %arg1: memref<1x4x684xf32, #tpu.memory_space<vmem>>, %arg2: memref<9x16x4xf32, #tpu.memory_space<vmem>>, %arg3: memref<16x1xf32, #tpu.memory_space<vmem>>, %arg4: memref<9x8x8xf32, #tpu.memory_space<vmem>>, %arg5: memref<8x1xf32, #tpu.memory_space<vmem>>, %arg6: memref<9x8x8xf32, #tpu.memory_space<vmem>>, %arg7: memref<8x1xf32, #tpu.memory_space<vmem>>, %arg8: memref<1x8x640xf32, #tpu.memory_space<vmem>>, %arg9: memref<8x812xf32, #tpu.memory_space<vmem>>) attributes {dimension_semantics = [#tpu.dimension_semantics<parallel>], iteration_bounds = array<i64: 1>, scalar_prefetch = 0 : i64, scratch_operands = 1 : i64, tpu.core_type = #tpu.core_type<tc>, window_params = [{transform_indices = @transform_0, window_bounds = array<i64: 1, 4, 684>}, {pipeline_mode = #tpu.pipeline_mode<synchronous>, transform_indices = @transform_1, window_bounds = array<i64: 9, 16, 4>}, {pipeline_mode = #tpu.pipeline_mode<synchronous>, transform_indices = @transform_2, window_bounds = array<i64: 16, 1>}, {pipeline_mode = #tpu.pipeline_mode<synchronous>, transform_indices = @transform_3, window_bounds = array<i64: 9, 8, 8>}, {pipeline_mode = #tpu.pipeline_mode<synchronous>, transform_indices = @transform_4, window_bounds = array<i64: 8, 1>}, {pipeline_mode = #tpu.pipeline_mode<synchronous>, transform_indices = @transform_5, window_bounds = array<i64: 9, 8, 8>}, {pipeline_mode = #tpu.pipeline_mode<synchronous>, transform_indices = @transform_6, window_bounds = array<i64: 8, 1>}, {transform_indices = @transform_7, window_bounds = array<i64: 1, 8, 640>}]} {
    %0 = tpu.iota {dimensions = array<i32: 1>} : vector<8x640xi32>
    %c342_i32 = arith.constant 342 : i32
    %c0_i32 = arith.constant 0 : i32
    %1 = arith.cmpi eq, %c342_i32, %c0_i32 : i32
    %c1_i32 = arith.constant 1 : i32
    %2 = arith.select %1, %c1_i32, %c342_i32 : i32
    %3 = vector.broadcast %2 : i32 to vector<8x640xi32>
    %4 = arith.remsi %0, %3 : vector<8x640xi32>
    %c0_i32_0 = arith.constant 0 : i32
    %5 = vector.broadcast %c0_i32_0 : i32 to vector<8x640xi32>
    %6 = arith.cmpi ne, %4, %5 : vector<8x640xi32>
    %c0_i32_1 = arith.constant 0 : i32
    %7 = vector.broadcast %c0_i32_1 : i32 to vector<8x640xi32>
    %8 = arith.cmpi slt, %4, %7 : vector<8x640xi32>
    %c0_i32_2 = arith.constant 0 : i32
    %9 = arith.cmpi slt, %2, %c0_i32_2 : i32
    %10 = vector.broadcast %9 : i1 to vector<8x640xi1>
    %11 = vector.broadcast %10 : vector<8x640xi1> to vector<8x640xi1>
    %12 = arith.xori %8, %11 : vector<8x640xi1>
    %13 = arith.andi %12, %6 : vector<8x640xi1>
    %14 = vector.broadcast %2 : i32 to vector<8x640xi32>
    %15 = arith.addi %4, %14 : vector<8x640xi32>
    %16 = arith.select %13, %15, %4 : vector<8x640xi1>, vector<8x640xi32>
    %c288_i32 = arith.constant 288 : i32
    %17 = vector.broadcast %c288_i32 : i32 to vector<8x640xi32>
    %18 = arith.cmpi slt, %16, %17 : vector<8x640xi32>
    %c18_i32 = arith.constant 18 : i32
    %c0_i32_3 = arith.constant 0 : i32
    %19 = arith.cmpi eq, %c18_i32, %c0_i32_3 : i32
    %c1_i32_4 = arith.constant 1 : i32
    %20 = arith.select %19, %c1_i32_4, %c18_i32 : i32
    %21 = vector.broadcast %20 : i32 to vector<8x640xi32>
    %22 = arith.remsi %16, %21 : vector<8x640xi32>
    %c0_i32_5 = arith.constant 0 : i32
    %23 = vector.broadcast %c0_i32_5 : i32 to vector<8x640xi32>
    %24 = arith.cmpi ne, %22, %23 : vector<8x640xi32>
    %c0_i32_6 = arith.constant 0 : i32
    %25 = vector.broadcast %c0_i32_6 : i32 to vector<8x640xi32>
    %26 = arith.cmpi slt, %22, %25 : vector<8x640xi32>
    %c0_i32_7 = arith.constant 0 : i32
    %27 = arith.cmpi slt, %20, %c0_i32_7 : i32
    %28 = vector.broadcast %27 : i1 to vector<8x640xi1>
    %29 = vector.broadcast %28 : vector<8x640xi1> to vector<8x640xi1>
    %30 = arith.xori %26, %29 : vector<8x640xi1>
    %31 = arith.andi %30, %24 : vector<8x640xi1>
    %32 = vector.broadcast %20 : i32 to vector<8x640xi32>
    %33 = arith.addi %22, %32 : vector<8x640xi32>
    %34 = arith.select %31, %33, %22 : vector<8x640xi1>, vector<8x640xi32>
    %c16_i32 = arith.constant 16 : i32
    %35 = vector.broadcast %c16_i32 : i32 to vector<8x640xi32>
    %36 = arith.cmpi slt, %34, %35 : vector<8x640xi32>
    %37 = arith.andi %18, %36 : vector<8x640xi1>
    %cst = arith.constant 0.000000e+00 : f32
    %38 = vector.broadcast %cst : f32 to vector<8x128xf32>
    %c0 = arith.constant 0 : index
    %c0_8 = arith.constant 0 : index
    %39 = vector.load %arg9[%c0, %c0_8] : memref<8x812xf32, #tpu.memory_space<vmem>>, vector<8x128xf32>
    tpu.vector_store %arg9[%c0, %c0_8], %38 {strides = array<i32>} : memref<8x812xf32, #tpu.memory_space<vmem>>, vector<8x128xf32>,
    %cst_9 = arith.constant 0.000000e+00 : f32
    %40 = vector.broadcast %cst_9 : f32 to vector<8x44xf32>
    %c0_10 = arith.constant 0 : index
    %c768 = arith.constant 768 : index
    %41 = vector.load %arg9[%c0_10, %c768] : memref<8x812xf32, #tpu.memory_space<vmem>>, vector<8x44xf32>
    tpu.vector_store %arg9[%c0_10, %c768], %40 {strides = array<i32>} : memref<8x812xf32, #tpu.memory_space<vmem>>, vector<8x44xf32>,
    %cst_11 = arith.constant 0.000000e+00 : f32
    %42 = vector.broadcast %cst_11 : f32 to vector<16x640xf32>
    %c0_12 = arith.constant 0 : index
    %c0_13 = arith.constant 0 : index
    %c0_14 = arith.constant 0 : index
    %43 = vector.load %arg2[%c0_12, %c0_13, %c0_14] : memref<9x16x4xf32, #tpu.memory_space<vmem>>, vector<1x16x4xf32>
    %44 = vector.shape_cast %43 : vector<1x16x4xf32> to vector<16x4xf32>
    %c0_15 = arith.constant 0 : index
    %c0_16 = arith.constant 0 : index
    %c0_17 = arith.constant 0 : index
    %45 = vector.load %arg1[%c0_15, %c0_16, %c0_17] : memref<1x4x684xf32, #tpu.memory_space<vmem>>, vector<1x4x640xf32>
    %46 = vector.shape_cast %45 : vector<1x4x640xf32> to vector<4x640xf32>
    %cst_18 = arith.constant dense<0.000000e+00> : vector<16x640xf32>
    %47 = tpu.matmul %44, %46, %cst_18 {dimension_numbers = #tpu.dot_dimension_numbers<[1], [0], [0], [1], [0, 0, 1, 1], [], []>} : vector<16x4xf32>, vector<4x640xf32>, vector<16x640xf32> -> vector<16x640xf32>
    %48 = arith.addf %42, %47 : vector<16x640xf32>
    %c1 = arith.constant 1 : index
    %c0_19 = arith.constant 0 : index
    %c0_20 = arith.constant 0 : index
    %49 = vector.load %arg2[%c1, %c0_19, %c0_20] : memref<9x16x4xf32, #tpu.memory_space<vmem>>, vector<1x16x4xf32>
    %50 = vector.shape_cast %49 : vector<1x16x4xf32> to vector<16x4xf32>
    %c0_21 = arith.constant 0 : index
    %c0_22 = arith.constant 0 : index
    %c1_23 = arith.constant 1 : index
    %51 = vector.load %arg1[%c0_21, %c0_22, %c1_23] : memref<1x4x684xf32, #tpu.memory_space<vmem>>, vector<1x4x640xf32>
    %52 = vector.shape_cast %51 : vector<1x4x640xf32> to vector<4x640xf32>
    %cst_24 = arith.constant dense<0.000000e+00> : vector<16x640xf32>
    %53 = tpu.matmul %50, %52, %cst_24 {dimension_numbers = #tpu.dot_dimension_numbers<[1], [0], [0], [1], [0, 0, 1, 1], [], []>} : vector<16x4xf32>, vector<4x640xf32>, vector<16x640xf32> -> vector<16x640xf32>
    %54 = arith.addf %48, %53 : vector<16x640xf32>
    %c2 = arith.constant 2 : index
    %c0_25 = arith.constant 0 : index
    %c0_26 = arith.constant 0 : index
    %55 = vector.load %arg2[%c2, %c0_25, %c0_26] : memref<9x16x4xf32, #tpu.memory_space<vmem>>, vector<1x16x4xf32>
    %56 = vector.shape_cast %55 : vector<1x16x4xf32> to vector<16x4xf32>
    %c0_27 = arith.constant 0 : index
    %c0_28 = arith.constant 0 : index
    %c2_29 = arith.constant 2 : index
    %57 = vector.load %arg1[%c0_27, %c0_28, %c2_29] : memref<1x4x684xf32, #tpu.memory_space<vmem>>, vector<1x4x640xf32>
    %58 = vector.shape_cast %57 : vector<1x4x640xf32> to vector<4x640xf32>
    %cst_30 = arith.constant dense<0.000000e+00> : vector<16x640xf32>
    %59 = tpu.matmul %56, %58, %cst_30 {dimension_numbers = #tpu.dot_dimension_numbers<[1], [0], [0], [1], [0, 0, 1, 1], [], []>} : vector<16x4xf32>, vector<4x640xf32>, vector<16x640xf32> -> vector<16x640xf32>
    %60 = arith.addf %54, %59 : vector<16x640xf32>
    %c3 = arith.constant 3 : index
    %c0_31 = arith.constant 0 : index
    %c0_32 = arith.constant 0 : index
    %61 = vector.load %arg2[%c3, %c0_31, %c0_32] : memref<9x16x4xf32, #tpu.memory_space<vmem>>, vector<1x16x4xf32>
    %62 = vector.shape_cast %61 : vector<1x16x4xf32> to vector<16x4xf32>
    %c0_33 = arith.constant 0 : index
    %c0_34 = arith.constant 0 : index
    %c18 = arith.constant 18 : index
    %63 = vector.load %arg1[%c0_33, %c0_34, %c18] : memref<1x4x684xf32, #tpu.memory_space<vmem>>, vector<1x4x640xf32>
    %64 = vector.shape_cast %63 : vector<1x4x640xf32> to vector<4x640xf32>
    %cst_35 = arith.constant dense<0.000000e+00> : vector<16x640xf32>
    %65 = tpu.matmul %62, %64, %cst_35 {dimension_numbers = #tpu.dot_dimension_numbers<[1], [0], [0], [1], [0, 0, 1, 1], [], []>} : vector<16x4xf32>, vector<4x640xf32>, vector<16x640xf32> -> vector<16x640xf32>
    %66 = arith.addf %60, %65 : vector<16x640xf32>
    %c4 = arith.constant 4 : index
    %c0_36 = arith.constant 0 : index
    %c0_37 = arith.constant 0 : index
    %67 = vector.load %arg2[%c4, %c0_36, %c0_37] : memref<9x16x4xf32, #tpu.memory_space<vmem>>, vector<1x16x4xf32>
    %68 = vector.shape_cast %67 : vector<1x16x4xf32> to vector<16x4xf32>
    %c0_38 = arith.constant 0 : index
    %c0_39 = arith.constant 0 : index
    %c19 = arith.constant 19 : index
    %69 = vector.load %arg1[%c0_38, %c0_39, %c19] : memref<1x4x684xf32, #tpu.memory_space<vmem>>, vector<1x4x640xf32>
    %70 = vector.shape_cast %69 : vector<1x4x640xf32> to vector<4x640xf32>
    %cst_40 = arith.constant dense<0.000000e+00> : vector<16x640xf32>
    %71 = tpu.matmul %68, %70, %cst_40 {dimension_numbers = #tpu.dot_dimension_numbers<[1], [0], [0], [1], [0, 0, 1, 1], [], []>} : vector<16x4xf32>, vector<4x640xf32>, vector<16x640xf32> -> vector<16x640xf32>
    %72 = arith.addf %66, %71 : vector<16x640xf32>
    %c5 = arith.constant 5 : index
    %c0_41 = arith.constant 0 : index
    %c0_42 = arith.constant 0 : index
    %73 = vector.load %arg2[%c5, %c0_41, %c0_42] : memref<9x16x4xf32, #tpu.memory_space<vmem>>, vector<1x16x4xf32>
    %74 = vector.shape_cast %73 : vector<1x16x4xf32> to vector<16x4xf32>
    %c0_43 = arith.constant 0 : index
    %c0_44 = arith.constant 0 : index
    %c20 = arith.constant 20 : index
    %75 = vector.load %arg1[%c0_43, %c0_44, %c20] : memref<1x4x684xf32, #tpu.memory_space<vmem>>, vector<1x4x640xf32>
    %76 = vector.shape_cast %75 : vector<1x4x640xf32> to vector<4x640xf32>
    %cst_45 = arith.constant dense<0.000000e+00> : vector<16x640xf32>
    %77 = tpu.matmul %74, %76, %cst_45 {dimension_numbers = #tpu.dot_dimension_numbers<[1], [0], [0], [1], [0, 0, 1, 1], [], []>} : vector<16x4xf32>, vector<4x640xf32>, vector<16x640xf32> -> vector<16x640xf32>
    %78 = arith.addf %72, %77 : vector<16x640xf32>
    %c6 = arith.constant 6 : index
    %c0_46 = arith.constant 0 : index
    %c0_47 = arith.constant 0 : index
    %79 = vector.load %arg2[%c6, %c0_46, %c0_47] : memref<9x16x4xf32, #tpu.memory_space<vmem>>, vector<1x16x4xf32>
    %80 = vector.shape_cast %79 : vector<1x16x4xf32> to vector<16x4xf32>
    %c0_48 = arith.constant 0 : index
    %c0_49 = arith.constant 0 : index
    %c36 = arith.constant 36 : index
    %81 = vector.load %arg1[%c0_48, %c0_49, %c36] : memref<1x4x684xf32, #tpu.memory_space<vmem>>, vector<1x4x640xf32>
    %82 = vector.shape_cast %81 : vector<1x4x640xf32> to vector<4x640xf32>
    %cst_50 = arith.constant dense<0.000000e+00> : vector<16x640xf32>
    %83 = tpu.matmul %80, %82, %cst_50 {dimension_numbers = #tpu.dot_dimension_numbers<[1], [0], [0], [1], [0, 0, 1, 1], [], []>} : vector<16x4xf32>, vector<4x640xf32>, vector<16x640xf32> -> vector<16x640xf32>
    %84 = arith.addf %78, %83 : vector<16x640xf32>
    %c7 = arith.constant 7 : index
    %c0_51 = arith.constant 0 : index
    %c0_52 = arith.constant 0 : index
    %85 = vector.load %arg2[%c7, %c0_51, %c0_52] : memref<9x16x4xf32, #tpu.memory_space<vmem>>, vector<1x16x4xf32>
    %86 = vector.shape_cast %85 : vector<1x16x4xf32> to vector<16x4xf32>
    %c0_53 = arith.constant 0 : index
    %c0_54 = arith.constant 0 : index
    %c37 = arith.constant 37 : index
    %87 = vector.load %arg1[%c0_53, %c0_54, %c37] : memref<1x4x684xf32, #tpu.memory_space<vmem>>, vector<1x4x640xf32>
    %88 = vector.shape_cast %87 : vector<1x4x640xf32> to vector<4x640xf32>
    %cst_55 = arith.constant dense<0.000000e+00> : vector<16x640xf32>
    %89 = tpu.matmul %86, %88, %cst_55 {dimension_numbers = #tpu.dot_dimension_numbers<[1], [0], [0], [1], [0, 0, 1, 1], [], []>} : vector<16x4xf32>, vector<4x640xf32>, vector<16x640xf32> -> vector<16x640xf32>
    %90 = arith.addf %84, %89 : vector<16x640xf32>
    %c8 = arith.constant 8 : index
    %c0_56 = arith.constant 0 : index
    %c0_57 = arith.constant 0 : index
    %91 = vector.load %arg2[%c8, %c0_56, %c0_57] : memref<9x16x4xf32, #tpu.memory_space<vmem>>, vector<1x16x4xf32>
    %92 = vector.shape_cast %91 : vector<1x16x4xf32> to vector<16x4xf32>
    %c0_58 = arith.constant 0 : index
    %c0_59 = arith.constant 0 : index
    %c38 = arith.constant 38 : index
    %93 = vector.load %arg1[%c0_58, %c0_59, %c38] : memref<1x4x684xf32, #tpu.memory_space<vmem>>, vector<1x4x640xf32>
    %94 = vector.shape_cast %93 : vector<1x4x640xf32> to vector<4x640xf32>
    %cst_60 = arith.constant dense<0.000000e+00> : vector<16x640xf32>
    %95 = tpu.matmul %92, %94, %cst_60 {dimension_numbers = #tpu.dot_dimension_numbers<[1], [0], [0], [1], [0, 0, 1, 1], [], []>} : vector<16x4xf32>, vector<4x640xf32>, vector<16x640xf32> -> vector<16x640xf32>
    %96 = arith.addf %90, %95 : vector<16x640xf32>
    %c0_61 = arith.constant 0 : index
    %c0_62 = arith.constant 0 : index
    %97 = vector.load %arg3[%c0_61, %c0_62] : memref<16x1xf32, #tpu.memory_space<vmem>>, vector<16x1xf32>
    %98 = vector.broadcast %97 : vector<16x1xf32> to vector<16x640xf32>
    %99 = arith.addf %96, %98 : vector<16x640xf32>
    %cst_63 = arith.constant 0.000000e+00 : f32
    %100 = vector.broadcast %cst_63 : f32 to vector<16x640xf32>
    %101 = arith.cmpf oge, %99, %100 : vector<16x640xf32>
    %cst_64 = arith.constant 2.000000e-01 : f32
    %102 = vector.broadcast %cst_64 : f32 to vector<16x640xf32>
    %103 = arith.mulf %102, %99 : vector<16x640xf32>
    %104 = arith.select %101, %99, %103 : vector<16x640xi1>, vector<16x640xf32>
    %105 = vector.extract_strided_slice %104 {offsets = [0, 0], sizes = [8, 640], strides = [1, 1]} : vector<16x640xf32> to vector<8x640xf32>
    %106 = vector.extract_strided_slice %104 {offsets = [8, 0], sizes = [8, 640], strides = [1, 1]} : vector<16x640xf32> to vector<8x640xf32>
    %cst_65 = arith.constant 0.000000e+00 : f32
    %107 = vector.broadcast %cst_65 : f32 to vector<8x640xf32>
    %108 = arith.select %37, %106, %107 : vector<8x640xi1>, vector<8x640xf32>
    %c0_66 = arith.constant 0 : index
    %c128 = arith.constant 128 : index
    %109 = vector.load %arg9[%c0_66, %c128] : memref<8x812xf32, #tpu.memory_space<vmem>>, vector<8x640xf32>
    tpu.vector_store %arg9[%c0_66, %c128], %108 {strides = array<i32>} : memref<8x812xf32, #tpu.memory_space<vmem>>, vector<8x640xf32>,
    %cst_67 = arith.constant 0.000000e+00 : f32
    %110 = vector.broadcast %cst_67 : f32 to vector<8x640xf32>
    %c0_68 = arith.constant 0 : index
    %c0_69 = arith.constant 0 : index
    %c0_70 = arith.constant 0 : index
    %111 = vector.load %arg4[%c0_68, %c0_69, %c0_70] : memref<9x8x8xf32, #tpu.memory_space<vmem>>, vector<1x8x8xf32>
    %112 = vector.shape_cast %111 : vector<1x8x8xf32> to vector<8x8xf32>
    %c0_71 = arith.constant 0 : index
    %c109 = arith.constant 109 : index
    %113 = vector.load %arg9[%c0_71, %c109] : memref<8x812xf32, #tpu.memory_space<vmem>>, vector<8x640xf32>
    %cst_72 = arith.constant dense<0.000000e+00> : vector<8x640xf32>
    %114 = tpu.matmul %112, %113, %cst_72 {dimension_numbers = #tpu.dot_dimension_numbers<[1], [0], [0], [1], [0, 0, 1, 1], [], []>} : vector<8x8xf32>, vector<8x640xf32>, vector<8x640xf32> -> vector<8x640xf32>
    %115 = arith.addf %110, %114 : vector<8x640xf32>
    %c1_73 = arith.constant 1 : index
    %c0_74 = arith.constant 0 : index
    %c0_75 = arith.constant 0 : index
    %116 = vector.load %arg4[%c1_73, %c0_74, %c0_75] : memref<9x8x8xf32, #tpu.memory_space<vmem>>, vector<1x8x8xf32>
    %117 = vector.shape_cast %116 : vector<1x8x8xf32> to vector<8x8xf32>
    %c0_76 = arith.constant 0 : index
    %c110 = arith.constant 110 : index
    %118 = vector.load %arg9[%c0_76, %c110] : memref<8x812xf32, #tpu.memory_space<vmem>>, vector<8x640xf32>
    %cst_77 = arith.constant dense<0.000000e+00> : vector<8x640xf32>
    %119 = tpu.matmul %117, %118, %cst_77 {dimension_numbers = #tpu.dot_dimension_numbers<[1], [0], [0], [1], [0, 0, 1, 1], [], []>} : vector<8x8xf32>, vector<8x640xf32>, vector<8x640xf32> -> vector<8x640xf32>
    %120 = arith.addf %115, %119 : vector<8x640xf32>
    %c2_78 = arith.constant 2 : index
    %c0_79 = arith.constant 0 : index
    %c0_80 = arith.constant 0 : index
    %121 = vector.load %arg4[%c2_78, %c0_79, %c0_80] : memref<9x8x8xf32, #tpu.memory_space<vmem>>, vector<1x8x8xf32>
    %122 = vector.shape_cast %121 : vector<1x8x8xf32> to vector<8x8xf32>
    %c0_81 = arith.constant 0 : index
    %c111 = arith.constant 111 : index
    %123 = vector.load %arg9[%c0_81, %c111] : memref<8x812xf32, #tpu.memory_space<vmem>>, vector<8x640xf32>
    %cst_82 = arith.constant dense<0.000000e+00> : vector<8x640xf32>
    %124 = tpu.matmul %122, %123, %cst_82 {dimension_numbers = #tpu.dot_dimension_numbers<[1], [0], [0], [1], [0, 0, 1, 1], [], []>} : vector<8x8xf32>, vector<8x640xf32>, vector<8x640xf32> -> vector<8x640xf32>
    %125 = arith.addf %120, %124 : vector<8x640xf32>
    %c3_83 = arith.constant 3 : index
    %c0_84 = arith.constant 0 : index
    %c0_85 = arith.constant 0 : index
    %126 = vector.load %arg4[%c3_83, %c0_84, %c0_85] : memref<9x8x8xf32, #tpu.memory_space<vmem>>, vector<1x8x8xf32>
    %127 = vector.shape_cast %126 : vector<1x8x8xf32> to vector<8x8xf32>
    %c0_86 = arith.constant 0 : index
    %c127 = arith.constant 127 : index
    %128 = vector.load %arg9[%c0_86, %c127] : memref<8x812xf32, #tpu.memory_space<vmem>>, vector<8x640xf32>
    %cst_87 = arith.constant dense<0.000000e+00> : vector<8x640xf32>
    %129 = tpu.matmul %127, %128, %cst_87 {dimension_numbers = #tpu.dot_dimension_numbers<[1], [0], [0], [1], [0, 0, 1, 1], [], []>} : vector<8x8xf32>, vector<8x640xf32>, vector<8x640xf32> -> vector<8x640xf32>
    %130 = arith.addf %125, %129 : vector<8x640xf32>
    %c4_88 = arith.constant 4 : index
    %c0_89 = arith.constant 0 : index
    %c0_90 = arith.constant 0 : index
    %131 = vector.load %arg4[%c4_88, %c0_89, %c0_90] : memref<9x8x8xf32, #tpu.memory_space<vmem>>, vector<1x8x8xf32>
    %132 = vector.shape_cast %131 : vector<1x8x8xf32> to vector<8x8xf32>
    %c0_91 = arith.constant 0 : index
    %c128_92 = arith.constant 128 : index
    %133 = vector.load %arg9[%c0_91, %c128_92] : memref<8x812xf32, #tpu.memory_space<vmem>>, vector<8x640xf32>
    %cst_93 = arith.constant dense<0.000000e+00> : vector<8x640xf32>
    %134 = tpu.matmul %132, %133, %cst_93 {dimension_numbers = #tpu.dot_dimension_numbers<[1], [0], [0], [1], [0, 0, 1, 1], [], []>} : vector<8x8xf32>, vector<8x640xf32>, vector<8x640xf32> -> vector<8x640xf32>
    %135 = arith.addf %130, %134 : vector<8x640xf32>
    %c5_94 = arith.constant 5 : index
    %c0_95 = arith.constant 0 : index
    %c0_96 = arith.constant 0 : index
    %136 = vector.load %arg4[%c5_94, %c0_95, %c0_96] : memref<9x8x8xf32, #tpu.memory_space<vmem>>, vector<1x8x8xf32>
    %137 = vector.shape_cast %136 : vector<1x8x8xf32> to vector<8x8xf32>
    %c0_97 = arith.constant 0 : index
    %c129 = arith.constant 129 : index
    %138 = vector.load %arg9[%c0_97, %c129] : memref<8x812xf32, #tpu.memory_space<vmem>>, vector<8x640xf32>
    %cst_98 = arith.constant dense<0.000000e+00> : vector<8x640xf32>
    %139 = tpu.matmul %137, %138, %cst_98 {dimension_numbers = #tpu.dot_dimension_numbers<[1], [0], [0], [1], [0, 0, 1, 1], [], []>} : vector<8x8xf32>, vector<8x640xf32>, vector<8x640xf32> -> vector<8x640xf32>
    %140 = arith.addf %135, %139 : vector<8x640xf32>
    %c6_99 = arith.constant 6 : index
    %c0_100 = arith.constant 0 : index
    %c0_101 = arith.constant 0 : index
    %141 = vector.load %arg4[%c6_99, %c0_100, %c0_101] : memref<9x8x8xf32, #tpu.memory_space<vmem>>, vector<1x8x8xf32>
    %142 = vector.shape_cast %141 : vector<1x8x8xf32> to vector<8x8xf32>
    %c0_102 = arith.constant 0 : index
    %c145 = arith.constant 145 : index
    %143 = vector.load %arg9[%c0_102, %c145] : memref<8x812xf32, #tpu.memory_space<vmem>>, vector<8x640xf32>
    %cst_103 = arith.constant dense<0.000000e+00> : vector<8x640xf32>
    %144 = tpu.matmul %142, %143, %cst_103 {dimension_numbers = #tpu.dot_dimension_numbers<[1], [0], [0], [1], [0, 0, 1, 1], [], []>} : vector<8x8xf32>, vector<8x640xf32>, vector<8x640xf32> -> vector<8x640xf32>
    %145 = arith.addf %140, %144 : vector<8x640xf32>
    %c7_104 = arith.constant 7 : index
    %c0_105 = arith.constant 0 : index
    %c0_106 = arith.constant 0 : index
    %146 = vector.load %arg4[%c7_104, %c0_105, %c0_106] : memref<9x8x8xf32, #tpu.memory_space<vmem>>, vector<1x8x8xf32>
    %147 = vector.shape_cast %146 : vector<1x8x8xf32> to vector<8x8xf32>
    %c0_107 = arith.constant 0 : index
    %c146 = arith.constant 146 : index
    %148 = vector.load %arg9[%c0_107, %c146] : memref<8x812xf32, #tpu.memory_space<vmem>>, vector<8x640xf32>
    %cst_108 = arith.constant dense<0.000000e+00> : vector<8x640xf32>
    %149 = tpu.matmul %147, %148, %cst_108 {dimension_numbers = #tpu.dot_dimension_numbers<[1], [0], [0], [1], [0, 0, 1, 1], [], []>} : vector<8x8xf32>, vector<8x640xf32>, vector<8x640xf32> -> vector<8x640xf32>
    %150 = arith.addf %145, %149 : vector<8x640xf32>
    %c8_109 = arith.constant 8 : index
    %c0_110 = arith.constant 0 : index
    %c0_111 = arith.constant 0 : index
    %151 = vector.load %arg4[%c8_109, %c0_110, %c0_111] : memref<9x8x8xf32, #tpu.memory_space<vmem>>, vector<1x8x8xf32>
    %152 = vector.shape_cast %151 : vector<1x8x8xf32> to vector<8x8xf32>
    %c0_112 = arith.constant 0 : index
    %c147 = arith.constant 147 : index
    %153 = vector.load %arg9[%c0_112, %c147] : memref<8x812xf32, #tpu.memory_space<vmem>>, vector<8x640xf32>
    %cst_113 = arith.constant dense<0.000000e+00> : vector<8x640xf32>
    %154 = tpu.matmul %152, %153, %cst_113 {dimension_numbers = #tpu.dot_dimension_numbers<[1], [0], [0], [1], [0, 0, 1, 1], [], []>} : vector<8x8xf32>, vector<8x640xf32>, vector<8x640xf32> -> vector<8x640xf32>
    %155 = arith.addf %150, %154 : vector<8x640xf32>
    %c0_114 = arith.constant 0 : index
    %c0_115 = arith.constant 0 : index
    %156 = vector.load %arg5[%c0_114, %c0_115] : memref<8x1xf32, #tpu.memory_space<vmem>>, vector<8x1xf32>
    %157 = vector.broadcast %156 : vector<8x1xf32> to vector<8x640xf32>
    %158 = arith.addf %155, %157 : vector<8x640xf32>
    %cst_116 = arith.constant 0.000000e+00 : f32
    %159 = vector.broadcast %cst_116 : f32 to vector<8x640xf32>
    %160 = arith.cmpf oge, %158, %159 : vector<8x640xf32>
    %cst_117 = arith.constant 2.000000e-01 : f32
    %161 = vector.broadcast %cst_117 : f32 to vector<8x640xf32>
    %162 = arith.mulf %161, %158 : vector<8x640xf32>
    %163 = arith.select %160, %158, %162 : vector<8x640xi1>, vector<8x640xf32>
    %cst_118 = arith.constant 0.000000e+00 : f32
    %164 = vector.broadcast %cst_118 : f32 to vector<8x640xf32>
    %165 = arith.select %37, %163, %164 : vector<8x640xi1>, vector<8x640xf32>
    %c0_119 = arith.constant 0 : index
    %c128_120 = arith.constant 128 : index
    %166 = vector.load %arg9[%c0_119, %c128_120] : memref<8x812xf32, #tpu.memory_space<vmem>>, vector<8x640xf32>
    tpu.vector_store %arg9[%c0_119, %c128_120], %165 {strides = array<i32>} : memref<8x812xf32, #tpu.memory_space<vmem>>, vector<8x640xf32>,
    %cst_121 = arith.constant 0.000000e+00 : f32
    %167 = vector.broadcast %cst_121 : f32 to vector<8x640xf32>
    %c0_122 = arith.constant 0 : index
    %c0_123 = arith.constant 0 : index
    %c0_124 = arith.constant 0 : index
    %168 = vector.load %arg6[%c0_122, %c0_123, %c0_124] : memref<9x8x8xf32, #tpu.memory_space<vmem>>, vector<1x8x8xf32>
    %169 = vector.shape_cast %168 : vector<1x8x8xf32> to vector<8x8xf32>
    %c0_125 = arith.constant 0 : index
    %c109_126 = arith.constant 109 : index
    %170 = vector.load %arg9[%c0_125, %c109_126] : memref<8x812xf32, #tpu.memory_space<vmem>>, vector<8x640xf32>
    %cst_127 = arith.constant dense<0.000000e+00> : vector<8x640xf32>
    %171 = tpu.matmul %169, %170, %cst_127 {dimension_numbers = #tpu.dot_dimension_numbers<[1], [0], [0], [1], [0, 0, 1, 1], [], []>} : vector<8x8xf32>, vector<8x640xf32>, vector<8x640xf32> -> vector<8x640xf32>
    %172 = arith.addf %167, %171 : vector<8x640xf32>
    %c1_128 = arith.constant 1 : index
    %c0_129 = arith.constant 0 : index
    %c0_130 = arith.constant 0 : index
    %173 = vector.load %arg6[%c1_128, %c0_129, %c0_130] : memref<9x8x8xf32, #tpu.memory_space<vmem>>, vector<1x8x8xf32>
    %174 = vector.shape_cast %173 : vector<1x8x8xf32> to vector<8x8xf32>
    %c0_131 = arith.constant 0 : index
    %c110_132 = arith.constant 110 : index
    %175 = vector.load %arg9[%c0_131, %c110_132] : memref<8x812xf32, #tpu.memory_space<vmem>>, vector<8x640xf32>
    %cst_133 = arith.constant dense<0.000000e+00> : vector<8x640xf32>
    %176 = tpu.matmul %174, %175, %cst_133 {dimension_numbers = #tpu.dot_dimension_numbers<[1], [0], [0], [1], [0, 0, 1, 1], [], []>} : vector<8x8xf32>, vector<8x640xf32>, vector<8x640xf32> -> vector<8x640xf32>
    %177 = arith.addf %172, %176 : vector<8x640xf32>
    %c2_134 = arith.constant 2 : index
    %c0_135 = arith.constant 0 : index
    %c0_136 = arith.constant 0 : index
    %178 = vector.load %arg6[%c2_134, %c0_135, %c0_136] : memref<9x8x8xf32, #tpu.memory_space<vmem>>, vector<1x8x8xf32>
    %179 = vector.shape_cast %178 : vector<1x8x8xf32> to vector<8x8xf32>
    %c0_137 = arith.constant 0 : index
    %c111_138 = arith.constant 111 : index
    %180 = vector.load %arg9[%c0_137, %c111_138] : memref<8x812xf32, #tpu.memory_space<vmem>>, vector<8x640xf32>
    %cst_139 = arith.constant dense<0.000000e+00> : vector<8x640xf32>
    %181 = tpu.matmul %179, %180, %cst_139 {dimension_numbers = #tpu.dot_dimension_numbers<[1], [0], [0], [1], [0, 0, 1, 1], [], []>} : vector<8x8xf32>, vector<8x640xf32>, vector<8x640xf32> -> vector<8x640xf32>
    %182 = arith.addf %177, %181 : vector<8x640xf32>
    %c3_140 = arith.constant 3 : index
    %c0_141 = arith.constant 0 : index
    %c0_142 = arith.constant 0 : index
    %183 = vector.load %arg6[%c3_140, %c0_141, %c0_142] : memref<9x8x8xf32, #tpu.memory_space<vmem>>, vector<1x8x8xf32>
    %184 = vector.shape_cast %183 : vector<1x8x8xf32> to vector<8x8xf32>
    %c0_143 = arith.constant 0 : index
    %c127_144 = arith.constant 127 : index
    %185 = vector.load %arg9[%c0_143, %c127_144] : memref<8x812xf32, #tpu.memory_space<vmem>>, vector<8x640xf32>
    %cst_145 = arith.constant dense<0.000000e+00> : vector<8x640xf32>
    %186 = tpu.matmul %184, %185, %cst_145 {dimension_numbers = #tpu.dot_dimension_numbers<[1], [0], [0], [1], [0, 0, 1, 1], [], []>} : vector<8x8xf32>, vector<8x640xf32>, vector<8x640xf32> -> vector<8x640xf32>
    %187 = arith.addf %182, %186 : vector<8x640xf32>
    %c4_146 = arith.constant 4 : index
    %c0_147 = arith.constant 0 : index
    %c0_148 = arith.constant 0 : index
    %188 = vector.load %arg6[%c4_146, %c0_147, %c0_148] : memref<9x8x8xf32, #tpu.memory_space<vmem>>, vector<1x8x8xf32>
    %189 = vector.shape_cast %188 : vector<1x8x8xf32> to vector<8x8xf32>
    %c0_149 = arith.constant 0 : index
    %c128_150 = arith.constant 128 : index
    %190 = vector.load %arg9[%c0_149, %c128_150] : memref<8x812xf32, #tpu.memory_space<vmem>>, vector<8x640xf32>
    %cst_151 = arith.constant dense<0.000000e+00> : vector<8x640xf32>
    %191 = tpu.matmul %189, %190, %cst_151 {dimension_numbers = #tpu.dot_dimension_numbers<[1], [0], [0], [1], [0, 0, 1, 1], [], []>} : vector<8x8xf32>, vector<8x640xf32>, vector<8x640xf32> -> vector<8x640xf32>
    %192 = arith.addf %187, %191 : vector<8x640xf32>
    %c5_152 = arith.constant 5 : index
    %c0_153 = arith.constant 0 : index
    %c0_154 = arith.constant 0 : index
    %193 = vector.load %arg6[%c5_152, %c0_153, %c0_154] : memref<9x8x8xf32, #tpu.memory_space<vmem>>, vector<1x8x8xf32>
    %194 = vector.shape_cast %193 : vector<1x8x8xf32> to vector<8x8xf32>
    %c0_155 = arith.constant 0 : index
    %c129_156 = arith.constant 129 : index
    %195 = vector.load %arg9[%c0_155, %c129_156] : memref<8x812xf32, #tpu.memory_space<vmem>>, vector<8x640xf32>
    %cst_157 = arith.constant dense<0.000000e+00> : vector<8x640xf32>
    %196 = tpu.matmul %194, %195, %cst_157 {dimension_numbers = #tpu.dot_dimension_numbers<[1], [0], [0], [1], [0, 0, 1, 1], [], []>} : vector<8x8xf32>, vector<8x640xf32>, vector<8x640xf32> -> vector<8x640xf32>
    %197 = arith.addf %192, %196 : vector<8x640xf32>
    %c6_158 = arith.constant 6 : index
    %c0_159 = arith.constant 0 : index
    %c0_160 = arith.constant 0 : index
    %198 = vector.load %arg6[%c6_158, %c0_159, %c0_160] : memref<9x8x8xf32, #tpu.memory_space<vmem>>, vector<1x8x8xf32>
    %199 = vector.shape_cast %198 : vector<1x8x8xf32> to vector<8x8xf32>
    %c0_161 = arith.constant 0 : index
    %c145_162 = arith.constant 145 : index
    %200 = vector.load %arg9[%c0_161, %c145_162] : memref<8x812xf32, #tpu.memory_space<vmem>>, vector<8x640xf32>
    %cst_163 = arith.constant dense<0.000000e+00> : vector<8x640xf32>
    %201 = tpu.matmul %199, %200, %cst_163 {dimension_numbers = #tpu.dot_dimension_numbers<[1], [0], [0], [1], [0, 0, 1, 1], [], []>} : vector<8x8xf32>, vector<8x640xf32>, vector<8x640xf32> -> vector<8x640xf32>
    %202 = arith.addf %197, %201 : vector<8x640xf32>
    %c7_164 = arith.constant 7 : index
    %c0_165 = arith.constant 0 : index
    %c0_166 = arith.constant 0 : index
    %203 = vector.load %arg6[%c7_164, %c0_165, %c0_166] : memref<9x8x8xf32, #tpu.memory_space<vmem>>, vector<1x8x8xf32>
    %204 = vector.shape_cast %203 : vector<1x8x8xf32> to vector<8x8xf32>
    %c0_167 = arith.constant 0 : index
    %c146_168 = arith.constant 146 : index
    %205 = vector.load %arg9[%c0_167, %c146_168] : memref<8x812xf32, #tpu.memory_space<vmem>>, vector<8x640xf32>
    %cst_169 = arith.constant dense<0.000000e+00> : vector<8x640xf32>
    %206 = tpu.matmul %204, %205, %cst_169 {dimension_numbers = #tpu.dot_dimension_numbers<[1], [0], [0], [1], [0, 0, 1, 1], [], []>} : vector<8x8xf32>, vector<8x640xf32>, vector<8x640xf32> -> vector<8x640xf32>
    %207 = arith.addf %202, %206 : vector<8x640xf32>
    %c8_170 = arith.constant 8 : index
    %c0_171 = arith.constant 0 : index
    %c0_172 = arith.constant 0 : index
    %208 = vector.load %arg6[%c8_170, %c0_171, %c0_172] : memref<9x8x8xf32, #tpu.memory_space<vmem>>, vector<1x8x8xf32>
    %209 = vector.shape_cast %208 : vector<1x8x8xf32> to vector<8x8xf32>
    %c0_173 = arith.constant 0 : index
    %c147_174 = arith.constant 147 : index
    %210 = vector.load %arg9[%c0_173, %c147_174] : memref<8x812xf32, #tpu.memory_space<vmem>>, vector<8x640xf32>
    %cst_175 = arith.constant dense<0.000000e+00> : vector<8x640xf32>
    %211 = tpu.matmul %209, %210, %cst_175 {dimension_numbers = #tpu.dot_dimension_numbers<[1], [0], [0], [1], [0, 0, 1, 1], [], []>} : vector<8x8xf32>, vector<8x640xf32>, vector<8x640xf32> -> vector<8x640xf32>
    %212 = arith.addf %207, %211 : vector<8x640xf32>
    %c0_176 = arith.constant 0 : index
    %c0_177 = arith.constant 0 : index
    %213 = vector.load %arg7[%c0_176, %c0_177] : memref<8x1xf32, #tpu.memory_space<vmem>>, vector<8x1xf32>
    %214 = vector.broadcast %213 : vector<8x1xf32> to vector<8x640xf32>
    %215 = arith.addf %212, %214 : vector<8x640xf32>
    %216 = arith.addf %215, %105 : vector<8x640xf32>
    %c0_178 = arith.constant 0 : index
    %c0_179 = arith.constant 0 : index
    %c0_180 = arith.constant 0 : index
    %217 = vector.load %arg8[%c0_178, %c0_179, %c0_180] : memref<1x8x640xf32, #tpu.memory_space<vmem>>, vector<1x8x640xf32>
    %218 = vector.shape_cast %217 : vector<1x8x640xf32> to vector<8x640xf32>
    %219 = vector.shape_cast %216 : vector<8x640xf32> to vector<1x8x640xf32>
    tpu.vector_store %arg8[%c0_178, %c0_179, %c0_180], %219 {strides = array<i32>} : memref<1x8x640xf32, #tpu.memory_space<vmem>>, vector<1x8x640xf32>,
    return
  }
  func.func @transform_0(%arg0: i32) -> (i32, i32, i32) {
    %c0_i32 = arith.constant 0 : i32
    %c0_i32_0 = arith.constant 0 : i32
    %c0_i32_1 = arith.constant 0 : i32
    return %arg0, %c0_i32, %c0_i32_0 : i32, i32, i32
  }
  func.func @transform_1(%arg0: i32) -> (i32, i32, i32) {
    %c0_i32 = arith.constant 0 : i32
    %c0_i32_0 = arith.constant 0 : i32
    %c0_i32_1 = arith.constant 0 : i32
    %c0_i32_2 = arith.constant 0 : i32
    return %c0_i32, %c0_i32_0, %c0_i32_1 : i32, i32, i32
  }
  func.func @transform_2(%arg0: i32) -> (i32, i32) {
    %c0_i32 = arith.constant 0 : i32
    %c0_i32_0 = arith.constant 0 : i32
    %c0_i32_1 = arith.constant 0 : i32
    return %c0_i32, %c0_i32_0 : i32, i32
  }
  func.func @transform_3(%arg0: i32) -> (i32, i32, i32) {
    %c0_i32 = arith.constant 0 : i32
    %c0_i32_0 = arith.constant 0 : i32
    %c0_i32_1 = arith.constant 0 : i32
    %c0_i32_2 = arith.constant 0 : i32
    return %c0_i32, %c0_i32_0, %c0_i32_1 : i32, i32, i32
  }
  func.func @transform_4(%arg0: i32) -> (i32, i32) {
    %c0_i32 = arith.constant 0 : i32
    %c0_i32_0 = arith.constant 0 : i32
    %c0_i32_1 = arith.constant 0 : i32
    return %c0_i32, %c0_i32_0 : i32, i32
  }
  func.func @transform_5(%arg0: i32) -> (i32, i32, i32) {
    %c0_i32 = arith.constant 0 : i32
    %c0_i32_0 = arith.constant 0 : i32
    %c0_i32_1 = arith.constant 0 : i32
    %c0_i32_2 = arith.constant 0 : i32
    return %c0_i32, %c0_i32_0, %c0_i32_1 : i32, i32, i32
  }
  func.func @transform_6(%arg0: i32) -> (i32, i32) {
    %c0_i32 = arith.constant 0 : i32
    %c0_i32_0 = arith.constant 0 : i32
    %c0_i32_1 = arith.constant 0 : i32
    return %c0_i32, %c0_i32_0 : i32, i32
  }
  func.func @transform_7(%arg0: i32) -> (i32, i32, i32) {
    %c0_i32 = arith.constant 0 : i32
    %c0_i32_0 = arith.constant 0 : i32
    %c0_i32_1 = arith.constant 0 : i32
    return %arg0, %c0_i32, %c0_i32_0 : i32, i32, i32
  }
}

</mosaic_0001>

<bundles_post_ra>
// kernel: res_block.1
= control target key start
LH: loop header
LB: loop body
LE: loop exit
PB: predicated region body
PF: predicated region fallthrough
CT: control target
= control target key end

     0   :  { %vm265_vm0 = vcmask 1043456   ;;  %v7834_v2 = vmov 0.0   ;;  %s7835_s28 = smov 126   ;;  %vm258_vm1 = vcmask 31744   ;;  %s7836_s10 = smov 127   ;;  %v7843_v10 = vmov 0   ;;  %s9000_s0 = inlined_call_operand.vmem [shape: f32[1,4,684], index: 0, kind: input, shape index: {}]   ;;  %s9001_s1 = inlined_call_operand.vmem [shape: f32[9,16,4], index: 1, kind: input, shape index: {}]   ;;  %s9002_s2 = inlined_call_operand.vmem [shape: f32[16,1], index: 2, kind: input, shape index: {}]   ;;  %s9003_s4 = inlined_call_operand.vmem [shape: f32[8,1], index: 4, kind: input, shape index: {}]   ;;  %s9004_s3 = inlined_call_operand.vmem [shape: f32[9,8,8], index: 3, kind: input, shape index: {}]   ;;  %s9005_s6 = inlined_call_operand.vmem [shape: f32[8,1], index: 6, kind: input, shape index: {}]   ;;  %s9006_s5 = inlined_call_operand.vmem [shape: f32[9,8,8], index: 5, kind: input, shape index: {}]   ;;  %s9007_s7 = inlined_call_operand.vmem [shape: f32[1,8,640], index: 7, kind: output, shape index: {}]  }
   0x1   :  { %v7893_v0 = vld [vmem:[%s9000_s0 + $0x8] sm:$0xff]  ;;  %v7898_v1 = vld [vmem:[%s9000_s0] sm:$0xff]  ;;  %586 = vmatprep.mubr.f32.mxu0 %v7834_v2  ;;  %222 = vst [vmem:[#allocation2] sm:$0xff] %v7834_v2  ;;  %340 = vmatprep.mubr.f32.mxu1 %v7834_v2  ;;  %v229_v5 = vld [vmem:[%s9000_s0 + $0x10] sm:$0xf]  ;;  %s7838_s15 = smov 109  }
   0x2   :  { %767 = vrot.lane.b32.xlu0 %v7893_v0, %s7835_s28  ;;  %763 = vrot.lane.b32.xlu1 %v7898_v1, %s7835_s28  ;;  %v7909_v3 = vcombine.high %v7898_v1, %v7898_v1  ;;  %v7916_v4 = vld [vmem:[%s9001_s1] sm:$0xff]  ;;  %v7930_v6 = vld [vmem:[%s9000_s0 + $0x10] sm:$0xff]  ;;  %v7954_v9 = vcombine.high %v7893_v0, %v7893_v0  ;;  %s7837_s0 = smov 110   ;;  %s7839_s16 = smov 108   ;;  %vm775_vm2 = vcmask 1031168   ;;  %vm252_vm3 = vcmask 1039360  }
   0x3   :  { %v7939_v7 = vld [vmem:[%s9001_s1 + $0x8] sm:$0xff]  ;;  %v762_v8 = vcombine.high %v7930_v6, %v7930_v6  ;;  %s7840_s17 = smov 92   ;;  %s7841_s18 = smov 91   ;;  %7817 = vset.pattern.permute.xlu0 %v7843_v10  ;;  %7818 = vset.pattern.permute.xlu1 %v7843_v10  ;;  %v8024_v18 = vld [vmem:[%s9001_s1 + $0x20] sm:$0xff]  ;;  %v7254_v23 = vld [vmem:[%s9001_s1 + $0x10] sm:$0xff]  ;;  %vm9009_vm4 = vcmask 900096  }
   0x4   :  { %7267 = vmatprep.subr.msk.mxu0 %vm265_vm0, %v7909_v3  ;;  %s7842_s19 = smov 90   ;;  %v2747_v11 = vld [vmem:[%s9002_s2 + $0x8] sm:$0xff]  ;;  %v7255_v28 = vld [vmem:[%s9001_s1 + $0x18] sm:$0xff]  ;;  %v8077_v38 = vld [vmem:[%s9001_s1 + $0x30] sm:$0xff]  ;;  %vm9008_vm5 = vcmask 891904   ;;  %vm1630_vm6 = vcmask 883712  }
   0x5   :  { %7268 = vmatpush1.msk.msra.mxu0 %vm265_vm0, %v7898_v1  ;;  %v8039_v24 = vld [vmem:[%s9001_s1 + $0x28] sm:$0xff]  ;;  %v8094_v44 = vld [vmem:[%s9001_s1 + $0x38] sm:$0xff]  ;;  %v7304_v53 = vld [vmem:[%s9001_s1 + $0x40] sm:$0xff]  ;;  %vm1915_vm7 = vcmask 752640   ;;  %vm2200_vm8 = vcmask 744448   ;;  %vm2485_vm9 = vcmask 736256  }
   0x6   :  { %765 = vrot.lane.b32.xlu0 %v7909_v3, %s7835_s28  ;;  %242 = vrot.lane.b32.xlu1 %v7909_v3, %s7836_s10  ;;  %v7305_v57 = vld [vmem:[%s9001_s1 + $0x48] sm:$0xff]  ;;  %s7845_s11 = smov 19   ;;  %s7847_s12 = smov 17  }
   0x7   :  { %7269 = vmatmul.mubr.msk.f32.vlgmr.msra.gmra.mrb[0].mxu0 %vm258_vm1, %v7916_v4  ;;  %7507 = vmatprep.subr.msk.mxu0 %vm265_vm0, %v229_v5  ;;  %s7848_s13 = smov 1   ;;  %s7849_s14 = smov 111  }
   0x8   :  { %592 = vmatprep.mubr.f32.mxu0 %v7834_v2  ;;  %7508 = vmatpush3.msk.msra.mxu0 %vm265_vm0, %v229_v5 }
   0xa   :  { %244 = vrot.lane.b32.xlu0 %v7893_v0, %s7836_s10  ;;  %240 = vrot.lane.b32.xlu1 %v7898_v1, %s7836_s10 }
   0xb   :  { %7270 = vmatmul.mubr.msk.f32.gmra.mrb[2].mxu0 %vm258_vm1, %v7939_v7 }
   0xc   :  { %7509 = vmatprep.mubr.msk.f32.mxu0 %vm258_vm1, %v7916_v4 }
   0xe   :  { %771 = vrot.lane.b32.xlu0 %v7930_v6, %s7835_s28  ;;  %773 = vrot.lane.b32.xlu1 %v762_v8, %s7835_s28 }
   0xf   :  { %7510 = vmatmul.mubr.msk.f32.vlgmr.msra.gmra.mrb[4].mxu0 %vm258_vm1, %v7939_v7 }
  0x10   :  { %861 = vmatprep.mubr.f32.mxu0 %v7834_v2 }
  0x12   :  { %246 = vrot.lane.b32.xlu0 %v7954_v9, %s7836_s10  ;;  %248 = vrot.lane.b32.xlu1 %v7930_v6, %s7836_s10 }
  0x16   :  { %1050 = vrot.lane.b32.xlu0 %v7909_v3, %s7837_s0  ;;  %1052 = vrot.lane.b32.xlu1 %v7893_v0, %s7837_s0 }
  0x1a   :  { %1048 = vrot.lane.b32.xlu0 %v7898_v1, %s7837_s0  ;;  %250 = vrot.lane.b32.xlu1 %v762_v8, %s7836_s10 }
  0x1e   :  { %1056 = vrot.lane.b32.xlu0 %v7930_v6, %s7837_s0  ;;  %1058 = vrot.lane.b32.xlu1 %v762_v8, %s7837_s0 }
  0x22   :  { %1335 = vrot.lane.b32.xlu0 %v7909_v3, %s7838_s15  ;;  %1337 = vrot.lane.b32.xlu1 %v7893_v0, %s7838_s15 }
  0x26   :  { %1333 = vrot.lane.b32.xlu0 %v7898_v1, %s7838_s15  ;;  %769 = vrot.lane.b32.xlu1 %v7954_v9, %s7835_s28 }
  0x2a   :  { %1341 = vrot.lane.b32.xlu0 %v7930_v6, %s7838_s15  ;;  %1343 = vrot.lane.b32.xlu1 %v762_v8, %s7838_s15 }
  0x2e   :  { %1620 = vrot.lane.b32.xlu0 %v7909_v3, %s7839_s16  ;;  %1622 = vrot.lane.b32.xlu1 %v7893_v0, %s7839_s16 }
  0x32   :  { %1618 = vrot.lane.b32.xlu0 %v7898_v1, %s7839_s16  ;;  %1054 = vrot.lane.b32.xlu1 %v7954_v9, %s7837_s0 }
  0x36   :  { %1626 = vrot.lane.b32.xlu0 %v7930_v6, %s7839_s16  ;;  %1628 = vrot.lane.b32.xlu1 %v762_v8, %s7839_s16 }
  0x3a   :  { %1339 = vrot.lane.b32.xlu0 %v7954_v9, %s7838_s15  ;;  %1905 = vrot.lane.b32.xlu1 %v7909_v3, %s7840_s17 }
  0x3e   :  { %1907 = vrot.lane.b32.xlu0 %v7893_v0, %s7840_s17  ;;  %1903 = vrot.lane.b32.xlu1 %v7898_v1, %s7840_s17 }
  0x42   :  { %1624 = vrot.lane.b32.xlu0 %v7954_v9, %s7839_s16  ;;  %1911 = vrot.lane.b32.xlu1 %v7930_v6, %s7840_s17 }
  0x46   :  { %1913 = vrot.lane.b32.xlu0 %v762_v8, %s7840_s17  ;;  %2190 = vrot.lane.b32.xlu1 %v7909_v3, %s7841_s18 }
  0x4a   :  { %2192 = vrot.lane.b32.xlu0 %v7893_v0, %s7841_s18  ;;  %2188 = vrot.lane.b32.xlu1 %v7898_v1, %s7841_s18 }
  0x4e   :  { %1909 = vrot.lane.b32.xlu0 %v7954_v9, %s7840_s17  ;;  %2196 = vrot.lane.b32.xlu1 %v7930_v6, %s7841_s18 }
  0x52   :  { %2198 = vrot.lane.b32.xlu0 %v762_v8, %s7841_s18  ;;  %2194 = vrot.lane.b32.xlu1 %v7954_v9, %s7841_s18 }
  0x56   :  { %2475 = vrot.lane.b32.xlu0 %v7909_v3, %s7842_s19  ;;  %2477 = vrot.lane.b32.xlu1 %v7893_v0, %s7842_s19  ;;  %v7317_v3 = vld [vmem:[%s9001_s1 + $0x50] sm:$0xff] }
  0x5a   :  { %2473 = vrot.lane.b32.xlu0 %v7898_v1, %s7842_s19  ;;  %2479 = vrot.lane.b32.xlu1 %v7954_v9, %s7842_s19 }
  0x5e   :  { %2481 = vrot.lane.b32.xlu0 %v7930_v6, %s7842_s19  ;;  %2483 = vrot.lane.b32.xlu1 %v762_v8, %s7842_s19 }
  0x62   :  { %2755 = vperm.xlu0 %7817, %v2747_v11  }
  0x74   :  { %v8016_v12 = vpop.permute.xlu0 %767  ;;  %v764_v13 = vpop.permute.xlu1 %763 }
  0x78   :  { %v766_v14 = vpop.permute.xlu0 %765  ;;  %v243_v15 = vpop.permute.xlu1 %242 }
  0x79   :  { %v776_v16 = vsel %vm775_vm2, %v764_v13, %v766_v14  ;;  %v777_v17 = vsel %vm775_vm2, %v766_v14, %v8016_v12 }
  0x7a   :  { %7280 = vmatprep.subr.msk.mxu0 %vm265_vm0, %v777_v17  ;;  %v7330_v17 = vld [vmem:[%s9001_s1 + $0x60] sm:$0xff] }
  0x7b   :  { %7281 = vmatpush1.msk.msra.mxu0 %vm265_vm0, %v776_v16 }
  0x7c   :  { %v245_v19 = vpop.permute.xlu0 %244  ;;  %v241_v20 = vpop.permute.xlu1 %240  ;;  %7282 = vmatmul.mubr.msk.f32.vlgmr.msra.gmra.mrb[0].mxu0 %vm258_vm1, %v8024_v18 }
  0x7d   :  { %v254_v21 = vsel %vm252_vm3, %v243_v15, %v245_v19  ;;  %v253_v22 = vsel %vm252_vm3, %v241_v20, %v243_v15  ;;  %867 = vmatprep.mubr.f32.mxu0 %v7834_v2 }
  0x7e   :  { %7256 = vmatprep.subr.msk.mxu1 %vm265_vm0, %v254_v21 }
  0x7f   :  { %7257 = vmatpush1.msk.msra.mxu1 %vm265_vm0, %v253_v22  ;;  %v7331_v22 = vld [vmem:[%s9001_s1 + $0x68] sm:$0xff] }
  0x80   :  { %v8043_v25 = vpop.permute.xlu0 %771  ;;  %v774_v26 = vpop.permute.xlu1 %773  ;;  %7258 = vmatmul.mubr.msk.f32.vlgmr.msra.gmra.mrb[0].mxu1 %vm258_vm1, %v7254_v23  ;;  %7283 = vmatmul.mubr.msk.f32.gmra.mrb[2].mxu0 %vm258_vm1, %v8039_v24 }
  0x81   :  { %v780_v27 = vsel %vm775_vm2, %v8043_v25, %v774_v26  ;;  %346 = vmatprep.mubr.f32.mxu1 %v7834_v2  ;;  %7514 = vmatprep.mubr.msk.f32.mxu0 %vm258_vm1, %v8024_v18 }
  0x82   :  { %7512 = vmatprep.subr.msk.mxu0 %vm265_vm0, %v780_v27 }
  0x83   :  { %7513 = vmatpush3.msk.msra.mxu0 %vm265_vm0, %v780_v27 }
  0x84   :  { %v247_v29 = vpop.permute.xlu0 %246  ;;  %v249_v30 = vpop.permute.xlu1 %248  ;;  %7259 = vmatmul.mubr.msk.f32.gmra.mrb[2].mxu1 %vm258_vm1, %v7255_v28  ;;  %7515 = vmatmul.mubr.msk.f32.vlgmr.msra.gmra.mrb[4].mxu0 %vm258_vm1, %v8039_v24 }
  0x85   :  { %v255_v31 = vsel %vm252_vm3, %v245_v19, %v247_v29  ;;  %v256_v32 = vsel %vm252_vm3, %v247_v29, %v249_v30  ;;  %417 = vmatprep.mubr.f32.mxu1 %v7834_v2  ;;  %1146 = vmatprep.mubr.f32.mxu0 %v7834_v2 }
  0x86   :  { %7260 = vmatprep.subr.msk.mxu1 %vm265_vm0, %v256_v32 }
  0x87   :  { %7261 = vmatpush1.msk.msra.mxu1 %vm265_vm0, %v255_v31 }
  0x88   :  { %v1051_v33 = vpop.permute.xlu0 %1050  ;;  %v8067_v34 = vpop.permute.xlu1 %1052  ;;  %7262 = vmatmul.mubr.msk.f32.vlgmr.msra.gmra.mrb[4].mxu1 %vm258_vm1, %v7254_v23 }
  0x89   :  { %v1062_v35 = vsel %vm9009_vm4, %v1051_v33, %v8067_v34  ;;  %423 = vmatprep.mubr.f32.mxu1 %v7834_v2 }
  0x8a   :  { %7293 = vmatprep.subr.msk.mxu0 %vm265_vm0, %v1062_v35  ;;  %v7344_v35 = vld [vmem:[%s9001_s1 + $0x78] sm:$0xff] }
  0x8c   :  { %v1049_v36 = vpop.permute.xlu0 %1048  ;;  %v251_v37 = vpop.permute.xlu1 %250  ;;  %7263 = vmatmul.mubr.msk.f32.gmra.mrb[6].mxu1 %vm258_vm1, %v7255_v28 }
  0x8d   :  { %v1061_v39 = vsel %vm9009_vm4, %v1049_v36, %v1051_v33  ;;  %v257_v40 = vsel %vm252_vm3, %v249_v30, %v251_v37  ;;  %7504 = vmatprep.mubr.msk.f32.mxu1 %vm258_vm1, %v7254_v23  ;;  %v7343_v30 = vld [vmem:[%s9001_s1 + $0x70] sm:$0xff] }
  0x8e   :  { %7502 = vmatprep.subr.msk.mxu1 %vm265_vm0, %v257_v40  ;;  %7294 = vmatpush1.msk.msra.mxu0 %vm265_vm0, %v1061_v39 }
  0x8f   :  { %7503 = vmatpush3.msk.msra.mxu1 %vm265_vm0, %v257_v40  ;;  %7295 = vmatmul.mubr.msk.f32.vlgmr.msra.gmra.mrb[0].mxu0 %vm258_vm1, %v8077_v38 }
  0x90   :  { %v1057_v41 = vpop.permute.xlu0 %1056  ;;  %v1059_v42 = vpop.permute.xlu1 %1058  ;;  %1152 = vmatprep.mubr.f32.mxu0 %v7834_v2  ;;  %7505 = vmatmul.mubr.msk.f32.vlgmr.msra.gmra.mrb[8].mxu1 %vm258_vm1, %v7255_v28 }
  0x91   :  { %v1065_v43 = vsel %vm9009_vm4, %v1057_v41, %v1059_v42  ;;  %7271 = vmatprep.subr.msk.mxu1 %vm265_vm0, %v7954_v9  ;;  %663 = vmatprep.mubr.f32.mxu1 %v7834_v2 }
  0x92   :  { %7517 = vmatprep.subr.msk.mxu0 %vm265_vm0, %v1065_v43  ;;  %7272 = vmatpush1.msk.msra.mxu1 %vm265_vm0, %v7893_v0 }
  0x93   :  { %7518 = vmatpush3.msk.msra.mxu0 %vm265_vm0, %v1065_v43 }
  0x94   :  { %v1336_v45 = vpop.permute.xlu0 %1335  ;;  %v8103_v46 = vpop.permute.xlu1 %1337  ;;  %7296 = vmatmul.mubr.msk.f32.gmra.mrb[2].mxu0 %vm258_vm1, %v8094_v44  ;;  %7273 = vmatmul.mubr.msk.f32.vlgmr.msra.gmra.mrb[4].mxu1 %vm258_vm1, %v7916_v4 }
  0x95   :  { %v1347_v47 = vsel %vm9008_vm5, %v1336_v45, %v8103_v46  ;;  %7519 = vmatprep.mubr.msk.f32.mxu0 %vm258_vm1, %v8077_v38  ;;  %669 = vmatprep.mubr.f32.mxu1 %v7834_v2 }
  0x96   :  { %7306 = vmatprep.subr.msk.mxu0 %vm265_vm0, %v1347_v47 }
  0x98   :  { %v1334_v48 = vpop.permute.xlu0 %1333  ;;  %v770_v49 = vpop.permute.xlu1 %769  ;;  %7520 = vmatmul.mubr.msk.f32.vlgmr.msra.gmra.mrb[4].mxu0 %vm258_vm1, %v8094_v44  ;;  %7274 = vmatmul.mubr.msk.f32.gmra.mrb[6].mxu1 %vm258_vm1, %v7939_v7  ;;  %v7318_v7 = vld [vmem:[%s9001_s1 + $0x58] sm:$0xff] }
  0x99   :  { %v1346_v50 = vsel %vm9008_vm5, %v1334_v48, %v1336_v45  ;;  %v778_v51 = vsel %vm775_vm2, %v8016_v12, %v770_v49  ;;  %v779_v52 = vsel %vm775_vm2, %v770_v49, %v8043_v25  ;;  %1431 = vmatprep.mubr.f32.mxu0 %v7834_v2  ;;  %938 = vmatprep.mubr.f32.mxu1 %v7834_v2 }
  0x9a   :  { %7284 = vmatprep.subr.msk.mxu1 %vm265_vm0, %v779_v52  ;;  %7307 = vmatpush1.msk.msra.mxu0 %vm265_vm0, %v1346_v50  ;;  %v7357_v50 = vld [vmem:[%s9001_s1 + $0x88] sm:$0xff] }
  0x9b   :  { %7285 = vmatpush1.msk.msra.mxu1 %vm265_vm0, %v778_v51 }
  0x9c   :  { %v1342_v54 = vpop.permute.xlu0 %1341  ;;  %v1344_v55 = vpop.permute.xlu1 %1343  ;;  %7308 = vmatmul.mubr.msk.f32.vlgmr.msra.gmra.mrb[0].mxu0 %vm258_vm1, %v7304_v53  ;;  %7286 = vmatmul.mubr.msk.f32.vlgmr.msra.gmra.mrb[4].mxu1 %vm258_vm1, %v8024_v18 }
  0x9d   :  { %v1350_v56 = vsel %vm9008_vm5, %v1342_v54, %v1344_v55  ;;  %1437 = vmatprep.mubr.f32.mxu0 %v7834_v2  ;;  %944 = vmatprep.mubr.f32.mxu1 %v7834_v2 }
  0x9e   :  { %7522 = vmatprep.subr.msk.mxu0 %vm265_vm0, %v1350_v56 }
  0x9f   :  { %7523 = vmatpush3.msk.msra.mxu0 %vm265_vm0, %v1350_v56 }
  0xa0   :  { %v1621_v58 = vpop.permute.xlu0 %1620  ;;  %v1623_v59 = vpop.permute.xlu1 %1622  ;;  %7309 = vmatmul.mubr.msk.f32.gmra.mrb[2].mxu0 %vm258_vm1, %v7305_v57  ;;  %7287 = vmatmul.mubr.msk.f32.gmra.mrb[6].mxu1 %vm258_vm1, %v8039_v24 }
  0xa1   :  { %v1632_v60 = vsel %vm1630_vm6, %v1621_v58, %v1623_v59  ;;  %7524 = vmatprep.mubr.msk.f32.mxu0 %vm258_vm1, %v7304_v53  ;;  %1223 = vmatprep.mubr.f32.mxu1 %v7834_v2 }
  0xa2   :  { %7319 = vmatprep.subr.msk.mxu0 %vm265_vm0, %v1632_v60 }
  0xa4   :  { %v1619_v61 = vpop.permute.xlu0 %1618  ;;  %v1055_v62 = vpop.permute.xlu1 %1054  ;;  %7525 = vmatmul.mubr.msk.f32.vlgmr.msra.gmra.mrb[4].mxu0 %vm258_vm1, %v7305_v57 }
  0xa5   :  { %v1631_v63 = vsel %vm1630_vm6, %v1619_v61, %v1621_v58  ;;  %v1063_v0 = vsel %vm9009_vm4, %v8067_v34, %v1055_v62  ;;  %v1064_v1 = vsel %vm9009_vm4, %v1055_v62, %v1057_v41  ;;  %1716 = vmatprep.mubr.f32.mxu0 %v7834_v2 }
  0xa6   :  { %7297 = vmatprep.subr.msk.mxu1 %vm265_vm0, %v1064_v1  ;;  %7320 = vmatpush1.msk.msra.mxu0 %vm265_vm0, %v1631_v63 }
  0xa7   :  { %7298 = vmatpush1.msk.msra.mxu1 %vm265_vm0, %v1063_v0 }
  0xa8   :  { %v1627_v4 = vpop.permute.xlu0 %1626  ;;  %v1629_v5 = vpop.permute.xlu1 %1628  ;;  %7321 = vmatmul.mubr.msk.f32.vlgmr.msra.gmra.mrb[0].mxu0 %vm258_vm1, %v7317_v3  ;;  %7299 = vmatmul.mubr.msk.f32.vlgmr.msra.gmra.mrb[4].mxu1 %vm258_vm1, %v8077_v38 }
  0xa9   :  { %v1635_v6 = vsel %vm1630_vm6, %v1627_v4, %v1629_v5  ;;  %1722 = vmatprep.mubr.f32.mxu0 %v7834_v2  ;;  %1229 = vmatprep.mubr.f32.mxu1 %v7834_v2 }
  0xaa   :  { %7527 = vmatprep.subr.msk.mxu0 %vm265_vm0, %v1635_v6 }
  0xab   :  { %7528 = vmatpush3.msk.msra.mxu0 %vm265_vm0, %v1635_v6 }
  0xac   :  { %v1340_v8 = vpop.permute.xlu0 %1339  ;;  %v1906_v9 = vpop.permute.xlu1 %1905  ;;  %7322 = vmatmul.mubr.msk.f32.gmra.mrb[2].mxu0 %vm258_vm1, %v7318_v7  ;;  %7300 = vmatmul.mubr.msk.f32.gmra.mrb[6].mxu1 %vm258_vm1, %v8094_v44 }
  0xad   :  { %v1348_v11 = vsel %vm9008_vm5, %v8103_v46, %v1340_v8  ;;  %v1349_v12 = vsel %vm9008_vm5, %v1340_v8, %v1342_v54  ;;  %7529 = vmatprep.mubr.msk.f32.mxu0 %vm258_vm1, %v7317_v3  ;;  %1508 = vmatprep.mubr.f32.mxu1 %v7834_v2  ;;  %v7356_v46 = vld [vmem:[%s9001_s1 + $0x80] sm:$0xff]  ;;  %s7844_s1 = smov 18   ;;  %v26_v54 = vlaneseq }
  0xae   :  { %7310 = vmatprep.subr.msk.mxu1 %vm265_vm0, %v1349_v12  ;;  %2823 = vrot.lane.b32.xlu0 %v7834_v2, %s7844_s1 }
  0xaf   :  { %7311 = vmatpush1.msk.msra.mxu1 %vm265_vm0, %v1348_v11  ;;  %v27_v55 = vand.u32 127, %v26_v54 }
  0xb0   :  { %v1908_v13 = vpop.permute.xlu0 %1907  ;;  %v1904_v14 = vpop.permute.xlu1 %1903  ;;  %7530 = vmatmul.mubr.msk.f32.vlgmr.msra.gmra.mrb[4].mxu0 %vm258_vm1, %v7318_v7  ;;  %7312 = vmatmul.mubr.msk.f32.vlgmr.msra.gmra.mrb[4].mxu1 %vm258_vm1, %v7304_v53 }
  0xb1   :  { %v1916_v15 = vsel %vm1915_vm7, %v1904_v14, %v1906_v9  ;;  %v1917_v16 = vsel %vm1915_vm7, %v1906_v9, %v1908_v13  ;;  %2001 = vmatprep.mubr.f32.mxu0 %v7834_v2  ;;  %1514 = vmatprep.mubr.f32.mxu1 %v7834_v2  ;;  %v28_v58 = vadd.s32 128, %v27_v55  ;;  %v30_v63 = vadd.s32 384, %v27_v55 }
  0xb2   :  { %7332 = vmatprep.subr.msk.mxu0 %vm265_vm0, %v1917_v16  ;;  %v8288_v61 = vmul.u32.u64.low 3214946280, %v27_v55  ;;  %v8289_v62 = vmul.u32.u64.high 3214946280, %v27_v55, %v8288_v61  ;;  %v29_v6 = vadd.s32 256, %v27_v55  ;;  %v31_v14 = vadd.s32 512, %v27_v55 }
  0xb3   :  { %7333 = vmatpush1.msk.msra.mxu0 %vm265_vm0, %v1916_v15  ;;  %v8291_v0 = vmul.u32.u64.low 3214946280, %v28_v58  ;;  %v8292_v1 = vmul.u32.u64.high 3214946280, %v28_v58, %v8291_v0 }
  0xb4   :  { %v1625_v18 = vpop.permute.xlu0 %1624  ;;  %v1912_v19 = vpop.permute.xlu1 %1911  ;;  %7334 = vmatmul.mubr.msk.f32.vlgmr.msra.gmra.mrb[0].mxu0 %vm258_vm1, %v7330_v17  ;;  %7313 = vmatmul.mubr.msk.f32.gmra.mrb[6].mxu1 %vm258_vm1, %v7305_v57  ;;  %vm38_vm10 = vc.u32 %v8288_v61, 3214946280 }
  0xb5   :  { %v1633_v20 = vsel %vm1630_vm6, %v1623_v59, %v1625_v18  ;;  %v1634_v21 = vsel %vm1630_vm6, %v1625_v18, %v1627_v4  ;;  %2007 = vmatprep.mubr.f32.mxu0 %v7834_v2  ;;  %1793 = vmatprep.mubr.f32.mxu1 %v7834_v2  ;;  %vm52_vm11 = vc.u32 %v8291_v0, 3214946280  ;;  %v39_v5 = vsel %vm38_vm10, 1, %v7843_v10 }
  0xb6   :  { %7323 = vmatprep.subr.msk.mxu1 %vm265_vm0, %v1634_v21  ;;  %v40_v8 = vadd.s32 %v8289_v62, %v39_v5 }
  0xb7   :  { %7324 = vmatpush1.msk.msra.mxu1 %vm265_vm0, %v1633_v20  ;;  %v8310_v20 = vmul.u32.u64.low 3214946280, %v31_v14  ;;  %v8311_v21 = vmul.u32.u64.high 3214946280, %v31_v14, %v8310_v20 }
  0xb8   :  { %v1914_v23 = vpop.permute.xlu0 %1913  ;;  %v2191_v24 = vpop.permute.xlu1 %2190  ;;  %7335 = vmatmul.mubr.msk.f32.gmra.mrb[2].mxu0 %vm258_vm1, %v7331_v22  ;;  %7325 = vmatmul.mubr.msk.f32.vlgmr.msra.gmra.mrb[4].mxu1 %vm258_vm1, %v7317_v3  ;;  %v8294_v3 = vmul.u32.u64.low 3214946280, %v30_v63  ;;  %v8295_v4 = vmul.u32.u64.high 3214946280, %v30_v63, %v8294_v3 }
  0xb9   :  { %v1920_v25 = vsel %vm1915_vm7, %v1912_v19, %v1914_v23  ;;  %7534 = vmatprep.mubr.msk.f32.mxu0 %vm258_vm1, %v7330_v17  ;;  %1799 = vmatprep.mubr.f32.mxu1 %v7834_v2  ;;  %vm94_vm14 = vc.u32 %v8310_v20, 3214946280 }
  0xba   :  { %7532 = vmatprep.subr.msk.mxu0 %vm265_vm0, %v1920_v25  ;;  %vm80_vm12 = vc.u32 %v8294_v3, 3214946280 }
  0xbb   :  { %7533 = vmatpush3.msk.msra.mxu0 %vm265_vm0, %v1920_v25  ;;  %v81_v16 = vsel %vm80_vm12, 1, %v7843_v10 }
  0xbc   :  { %v2193_v26 = vpop.permute.xlu0 %2192  ;;  %v2189_v27 = vpop.permute.xlu1 %2188  ;;  %7535 = vmatmul.mubr.msk.f32.vlgmr.msra.gmra.mrb[4].mxu0 %vm258_vm1, %v7331_v22  ;;  %7326 = vmatmul.mubr.msk.f32.gmra.mrb[6].mxu1 %vm258_vm1, %v7318_v7  ;;  %v53_v7 = vsel %vm52_vm11, 1, %v7843_v10  ;;  %v82_v18 = vadd.s32 %v8295_v4, %v81_v16 }
  0xbd   :  { %v2201_v28 = vsel %vm2200_vm8, %v2189_v27, %v2191_v24  ;;  %v2202_v29 = vsel %vm2200_vm8, %v2191_v24, %v2193_v26  ;;  %2286 = vmatprep.mubr.f32.mxu0 %v7834_v2  ;;  %2078 = vmatprep.mubr.f32.mxu1 %v7834_v2  ;;  %v54_v15 = vadd.s32 %v8292_v1, %v53_v7 }
  0xbe   :  { %7345 = vmatprep.subr.msk.mxu0 %vm265_vm0, %v2202_v29  ;;  %v83_v24 = vshrl.u32 %v82_v18, 8 }
  0xbf   :  { %7346 = vmatpush1.msk.msra.mxu0 %vm265_vm0, %v2201_v28  ;;  %v95_v28 = vsel %vm94_vm14, 1, %v7843_v10 }
  0xc0   :  { %v1910_v31 = vpop.permute.xlu0 %1909  ;;  %v2197_v32 = vpop.permute.xlu1 %2196  ;;  %7347 = vmatmul.mubr.msk.f32.vlgmr.msra.gmra.mrb[0].mxu0 %vm258_vm1, %v7343_v30  ;;  %v84_v29 = vmul.u32 342, %v83_v24 }
  0xc1   :  { %v1918_v33 = vsel %vm1915_vm7, %v1908_v13, %v1910_v31  ;;  %v1919_v34 = vsel %vm1915_vm7, %v1910_v31, %v1912_v19  ;;  %2292 = vmatprep.mubr.f32.mxu0 %v7834_v2  ;;  %v8304_v12 = vmul.u32.u64.low 3214946280, %v29_v6  ;;  %v8305_v13 = vmul.u32.u64.high 3214946280, %v29_v6, %v8304_v12 }
  0xc2   :  { %7336 = vmatprep.subr.msk.mxu1 %vm265_vm0, %v1919_v34  ;;  %v55_v19 = vshrl.u32 %v54_v15, 8 }
  0xc3   :  { %7337 = vmatpush1.msk.msra.mxu1 %vm265_vm0, %v1918_v33  ;;  %vm66_vm13 = vc.u32 %v8304_v12, 3214946280  ;;  %v85_v33 = vsub.s32 %v30_v63, %v84_v29 }
  0xc4   :  { %v2199_v36 = vpop.permute.xlu0 %2198  ;;  %7338 = vmatmul.mubr.msk.f32.vlgmr.msra.gmra.mrb[4].mxu1 %vm258_vm1, %v7330_v17  ;;  %v2195_v37 = vpop.permute.xlu1 %2194  ;;  %7348 = vmatmul.mubr.msk.f32.gmra.mrb[2].mxu0 %vm258_vm1, %v7344_v35  ;;  %v41_v17 = vshrl.u32 %v40_v8, 8  ;;  %v67_v23 = vsel %vm66_vm13, 1, %v7843_v10  ;;  %v56_v25 = vmul.u32 342, %v55_v19 }
  0xc5   :  { %v2205_v38 = vsel %vm2200_vm8, %v2197_v32, %v2199_v36  ;;  %v2203_v39 = vsel %vm2200_vm8, %v2193_v26, %v2195_v37  ;;  %v2204_v40 = vsel %vm2200_vm8, %v2195_v37, %v2197_v32  ;;  %2084 = vmatprep.mubr.f32.mxu1 %v7834_v2  ;;  %7539 = vmatprep.mubr.msk.f32.mxu0 %vm258_vm1, %v7343_v30  ;;  %vm110_vm10 = vcmp.lt.s32.totalorder %v85_v33, 0 }
  0xc6   :  { %7349 = vmatprep.subr.msk.mxu1 %vm265_vm0, %v2204_v40  ;;  %7537 = vmatprep.subr.msk.mxu0 %vm265_vm0, %v2205_v38  ;;  %v68_v26 = vadd.s32 %v8305_v13, %v67_v23  ;;  %v96_v32 = vadd.s32 %v8311_v21, %v95_v28 }
  0xc7   :  { %7350 = vmatpush1.msk.msra.mxu1 %vm265_vm0, %v2203_v39  ;;  %7538 = vmatpush3.msk.msra.mxu0 %vm265_vm0, %v2205_v38  ;;  %v120_v39 = vadd.s32 342, %v85_v33 }
  0xc8   :  { %v2476_v41 = vpop.permute.xlu0 %2475  ;;  %7339 = vmatmul.mubr.msk.f32.gmra.mrb[6].mxu1 %vm258_vm1, %v7331_v22  ;;  %v2478_v42 = vpop.permute.xlu1 %2477  ;;  %7540 = vmatmul.mubr.msk.f32.vlgmr.msra.gmra.mrb[4].mxu0 %vm258_vm1, %v7344_v35  ;;  %v42_v22 = vmul.u32 342, %v41_v17  ;;  %v69_v31 = vshrl.u32 %v68_v26, 8  ;;  %v97_v37 = vshrl.u32 %v96_v32, 8 }
  0xc9   :  { %2363 = vmatprep.mubr.f32.mxu1 %v7834_v2  ;;  %v2487_v43 = vsel %vm2485_vm9, %v2476_v41, %v2478_v42  ;;  %2571 = vmatprep.mubr.f32.mxu0 %v7834_v2 }
  0xca   :  { %7358 = vmatprep.subr.msk.mxu0 %vm265_vm0, %v2487_v43  ;;  %v43_v27 = vsub.s32 %v27_v55, %v42_v22 }
  0xcc   :  { %v2474_v44 = vpop.permute.xlu0 %2473  ;;  %7351 = vmatmul.mubr.msk.f32.vlgmr.msra.gmra.mrb[4].mxu1 %vm258_vm1, %v7343_v30  ;;  %v2480_v45 = vpop.permute.xlu1 %2479  ;;  %v57_v30 = vsub.s32 %v28_v58, %v56_v25  ;;  %vm102_vm15 = vcmp.ne.s32.totalorder %v43_v27, 0  ;;  %v117_v34 = vadd.s32 342, %v43_v27 }
  0xcd   :  { %v2486_v47 = vsel %vm2485_vm9, %v2474_v44, %v2476_v41  ;;  %2369 = vmatprep.mubr.f32.mxu1 %v7834_v2  ;;  %v2488_v53 = vsel %vm2485_vm9, %v2478_v42, %v2480_v45  ;;  %v98_v41 = vmul.u32 342, %v97_v37 }
  0xce   :  { %7359 = vmatpush1.msk.msra.mxu0 %vm265_vm0, %v2486_v47  ;;  %vm103_vm2 = vcmp.ne.s32.totalorder %v57_v30, 0  ;;  %vm108_vm6 = vcmp.lt.s32.totalorder %v57_v30, 0  ;;  %v118_v36 = vadd.s32 342, %v57_v30 }
  0xcf   :  { %7360 = vmatmul.mubr.msk.f32.vlgmr.msra.gmra.mrb[0].mxu0 %vm258_vm1, %v7356_v46  ;;  %vm113_vm8 = vmand %vm108_vm6, %vm103_vm2  ;;  %v99_v44 = vsub.s32 %v31_v14, %v98_v41 }
  0xd0   :  { %v2482_v48 = vpop.permute.xlu0 %2481  ;;  %7352 = vmatmul.mubr.msk.f32.gmra.mrb[6].mxu1 %vm258_vm1, %v7344_v35  ;;  %2577 = vmatprep.mubr.f32.mxu0 %v7834_v2  ;;  %v2484_v49 = vpop.permute.xlu1 %2483  ;;  %v70_v35 = vmul.u32 342, %v69_v31  ;;  %v8320_v40 = vsel %vm113_vm8, %v118_v36, %v57_v30 }
  0xd1   :  { %v2489_v51 = vsel %vm2485_vm9, %v2480_v45, %v2482_v48  ;;  %2648 = vmatprep.mubr.f32.mxu1 %v7834_v2  ;;  %v2490_v52 = vsel %vm2485_vm9, %v2482_v48, %v2484_v49  ;;  %vm105_vm9 = vcmp.ne.s32.totalorder %v85_v33, 0  ;;  %v144_v42 = vsub.s32 0, %v8320_v40 }
  0xd2   :  { %7362 = vmatprep.subr.msk.mxu1 %vm265_vm0, %v2489_v51  ;;  %7542 = vmatprep.subr.msk.mxu0 %vm265_vm0, %v2490_v52  ;;  %v71_v38 = vsub.s32 %v29_v6, %v70_v35  ;;  %vm115_vm11 = vmand %vm110_vm10, %vm105_vm9  ;;  %vm143_vm6 = vcmp.lt.s32.totalorder %v8320_v40, 0 }
  0xd3   :  { %7363 = vmatpush1.msk.msra.mxu1 %vm265_vm0, %v2488_v53  ;;  %7361 = vmatmul.mubr.msk.f32.gmra.mrb[2].mxu0 %vm258_vm1, %v7357_v50  ;;  %v8324_v43 = vsel %vm115_vm11, %v120_v39, %v85_v33  ;;  %v7250_v48 = vmin.u32 %v144_v42, %v8320_v40 }
  0xd4   :  { %7364 = vmatmul.mubr.msk.f32.vlgmr.msra.gmra.mrb[4].mxu1 %vm258_vm1, %v7356_v46  ;;  %7543 = vmatpush3.msk.msra.mxu0 %vm265_vm0, %v2490_v52  ;;  %vm107_vm0 = vcmp.lt.s32.totalorder %v43_v27, 0  ;;  %vm104_vm12 = vcmp.ne.s32.totalorder %v71_v38, 0  ;;  %vm109_vm13 = vcmp.lt.s32.totalorder %v71_v38, 0  ;;  %v166_v47 = vsub.s32 0, %v8324_v43 }
  0xd5   :  { %7544 = vmatprep.mubr.msk.f32.mxu0 %vm258_vm1, %v7356_v46  ;;  %2654 = vmatprep.mubr.f32.mxu1 %v7834_v2  ;;  %vm112_vm7 = vmand %vm107_vm0, %vm102_vm15  ;;  %v119_v46 = vadd.s32 342, %v71_v38  ;;  %vm106_vm15 = vcmp.ne.s32.totalorder %v99_v44, 0  ;;  %vm111_vm0 = vcmp.lt.s32.totalorder %v99_v44, 0  ;;  %v121_v52 = vadd.s32 342, %v99_v44 }
  0xd6   :  { %7562 = vmatprep.subr.mxu0 %v7834_v2  ;;  %v8318_v10 = vsel %vm112_vm7, %v117_v34, %v43_v27  ;;  %vm114_vm14 = vmand %vm109_vm13, %vm104_vm12  ;;  %v7252_v53 = vmin.u32 %v166_v47, %v8324_v43  ;;  %v8335_v54 = vmul.u32.u64.low 3817748708, %v7250_v48  ;;  %v8336_v55 = vmul.u32.u64.high 3817748708, %v7250_v48, %v8335_v54 }
  0xd7   :  { %7545 = vmatmul.mubr.msk.f32.vlgmr.msra.gmra.mrb[4].mxu0 %vm258_vm1, %v7357_v50  ;;  %v8332_v51 = vsel %vm114_vm14, %v119_v46, %v71_v38  ;;  %vm132_vm2 = vcmp.lt.s32.totalorder %v8318_v10, 0  ;;  %vm165_vm7 = vcmp.lt.s32.totalorder %v8324_v43, 0 }
  0xd8   :  { %7365 = vmatmul.mubr.msk.f32.gmra.mrb[6].mxu1 %vm258_vm1, %v7357_v50  ;;  %vm223_vm1 = vcmask 359424   ;;  %v155_v58 = vsub.s32 0, %v8332_v51  ;;  %v8341_v62 = vmul.u32.u64.low 3817748708, %v7252_v53  ;;  %v8342_v63 = vmul.u32.u64.high 3817748708, %v7252_v53, %v8341_v62 }
  0xd9   :  { %2914 = vmatprep.mubr.f32.mxu1 %v7834_v2  ;;  %224 = vst.msk [vmem:[#allocation2 + $0x30] sm:$0xff] %vm223_vm1, %v7834_v2  ;;  %v133_v2 = vsub.s32 0, %v8318_v10  ;;  %vm116_vm1 = vmand %vm111_vm0, %vm106_vm15  ;;  %v149_v4 = vshrl.u32 %v8336_v55, 4  ;;  %vm154_vm14 = vcmp.lt.s32.totalorder %v8332_v51, 0 }
  0xda   :  { %v8339_v61 = vsel %vm116_vm1, %v121_v52, %v99_v44  ;;  %v7251_v0 = vmin.u32 %v155_v58, %v8332_v51  ;;  %v171_v12 = vshrl.u32 %v8342_v63, 4 }
  0xdb   :  { %v7249_v45 = vmin.u32 %v133_v2, %v8318_v10  ;;  %v177_v3 = vsub.s32 0, %v8339_v61  ;;  %v150_v13 = vmul.u32 18, %v149_v4 }
  0xdc   :  { %v8348_v5 = vmul.u32.u64.low 3817748708, %v7251_v0  ;;  %v8349_v6 = vmul.u32.u64.high 3817748708, %v7251_v0, %v8348_v5  ;;  %v172_v17 = vmul.u32 18, %v171_v12 }
  0xdd   :  { %v8329_v49 = vmul.u32.u64.low 3817748708, %v7249_v45  ;;  %v8330_v50 = vmul.u32.u64.high 3817748708, %v7249_v45, %v8329_v49  ;;  %v7253_v8 = vmin.u32 %v177_v3, %v8339_v61  ;;  %v151_v18 = vsub.s32 %v7250_v48, %v150_v13 }
  0xde   :  { %v160_v19 = vshrl.u32 %v8349_v6, 4  ;;  %v173_v21 = vsub.s32 %v7252_v53, %v172_v17 }
  0xdf   :  { %v138_v1 = vshrl.u32 %v8330_v50, 4  ;;  %v8353_v15 = vmul.u32.u64.low 3817748708, %v7253_v8  ;;  %v8354_v16 = vmul.u32.u64.high 3817748708, %v7253_v8, %v8353_v15  ;;  %v152_v22 = vsub.s32 0, %v151_v18 }
  0xe0   :  { %v161_v23 = vmul.u32 18, %v160_v19  ;;  %v174_v26 = vsub.s32 0, %v173_v21 }
  0xe1   :  { %v139_v7 = vmul.u32 18, %v138_v1  ;;  %v182_v25 = vshrl.u32 %v8354_v16, 4  ;;  %v153_v27 = vsel %vm143_vm6, %v152_v22, %v151_v18  ;;  %v8378_v42 = vpop.permute.xlu0 %2755 }
  0xe2   :  { %v162_v28 = vsub.s32 %v7251_v0, %v161_v23  ;;  %vm188_vm10 = vcmp.ne.s32.totalorder %v153_v27, 0  ;;  %vm193_vm11 = vcmp.lt.s32.totalorder %v153_v27, 0  ;;  %v175_v31 = vsel %vm165_vm7, %v174_v26, %v173_v21 }
  0xe3   :  { %v140_v14 = vsub.s32 %v7249_v45, %v139_v7  ;;  %v183_v29 = vmul.u32 18, %v182_v25  ;;  %v203_v36 = vadd.s32 18, %v153_v27  ;;  %vm8371_vm13 = vmand %vm193_vm11, %vm188_vm10  ;;  %vm190_vm15 = vcmp.ne.s32.totalorder %v175_v31, 0  ;;  %v8472_v25 = vld [vmem:[#allocation2] sm:$0xff] }
  0xe4   :  { %v163_v37 = vsub.s32 0, %v162_v28  ;;  %vm195_vm0 = vcmp.lt.s32.totalorder %v175_v31, 0  ;;  %v205_v44 = vadd.s32 18, %v175_v31  ;;  %vm128_vm7 = vcmp.lt.s32.totalorder %v8320_v40, 288 }
  0xe5   :  { %v141_v20 = vsub.s32 0, %v140_v14  ;;  %v184_v2 = vsub.s32 %v7253_v8, %v183_v29  ;;  %v208_v47 = vsel %vm8371_vm13, %v203_v36, %v153_v27  ;;  %vm8385_vm1 = vmand %vm195_vm0, %vm190_vm15  ;;  %vm130_vm15 = vcmp.lt.s32.totalorder %v8324_v43, 288 }
  0xe6   :  { %v164_v48 = vsel %vm154_vm14, %v163_v37, %v162_v28 }
  0xe7   :  { %v142_v24 = vsel %vm132_vm2, %v141_v20, %v140_v14  ;;  %vm127_vm2 = vcmp.lt.s32.totalorder %v8318_v10, 288  ;;  %v185_v53 = vsub.s32 0, %v184_v2  ;;  %vm189_vm10 = vcmp.ne.s32.totalorder %v164_v48, 0  ;;  %v7423_v10 = vld [vmem:[%s9006_s5 + $0x28] sm:$0xff] }
  0xe8   :  { %vm187_vm8 = vcmp.ne.s32.totalorder %v142_v24, 0  ;;  %vm192_vm9 = vcmp.lt.s32.totalorder %v142_v24, 0  ;;  %v202_v30 = vadd.s32 18, %v142_v24  ;;  %vm194_vm13 = vcmp.lt.s32.totalorder %v164_v48, 0 }
  0xe9   :  { %vm8361_vm12 = vmand %vm192_vm9, %vm187_vm8  ;;  %vm176_vm8 = vcmp.lt.s32.totalorder %v8339_v61, 0  ;;  %vm8396_vm9 = vcmp.lt.s32.totalorder %v208_v47, 16  ;;  %v204_v7 = vadd.s32 18, %v164_v48 }
  0xea   :  { %v207_v41 = vsel %vm8361_vm12, %v202_v30, %v142_v24  ;;  %v186_v15 = vsel %vm176_vm8, %v185_v53, %v184_v2  ;;  %vm129_vm8 = vcmp.lt.s32.totalorder %v8332_v51, 288  ;;  %v8536_v30 = vld [vmem:[#allocation2 + $0x30] sm:$0xff] }
  0xeb   :  { %vm212_vm6 = vcmp.lt.s32.totalorder %v207_v41, 16  ;;  %v206_v21 = vadd.s32 18, %v186_v15  ;;  %v7369_v41 = vld [vmem:[%s9004_s3 + $0x8] sm:$0xff] }
  0xec   :  { %vm8403_vm11 = vmand %vm127_vm2, %vm212_vm6 }
  0xed   :  { %vm8429_vm2 = vmand %vm128_vm7, %vm8396_vm9  ;;  %vm191_vm9 = vcmp.ne.s32.totalorder %v186_v15, 0 }
 0x153   :  { %v8280_v56 = vpop.f32.mrb[0].mxu1 }
 0x154   :  { %v8282_v57 = vpop.f32.mrb[1].mxu1 }
 0x157   :  { %v8284_v59 = vpop.f32.mrb[2].mxu1 }
 0x158   :  { %v8286_v60 = vpop.f32.mrb[3].mxu1 }
 0x163   :  { %v8300_v9 = vpop.f32.mrb[8].mxu1 }
 0x164   :  { %v8302_v11 = vpop.f32.mrb[9].mxu1 }
 0x1a2   :  { %v2573_v32 = vpop.f32.mrb[0].mxu0 }
 0x1a3   :  { %v8366_v34 = vadd.f32 %v2573_v32, %v8280_v56  ;;  %v2575_v35 = vpop.f32.mrb[1].mxu0  ;;  %v2824_v32 = vpop.permute.xlu0 %2823 }
 0x1a4   :  { %v8369_v38 = vadd.f32 %v2575_v35, %v8282_v57 }
 0x1a6   :  { %v2579_v56 = vpop.f32.mrb[2].mxu0 }
 0x1a7   :  { %v7639_v45 = vadd.f32 %v2579_v56, %v8284_v59  ;;  %v2581_v57 = vpop.f32.mrb[3].mxu0  ;;  %v8381_v46 = vpop.f32.mrb[4].mxu1 }
 0x1a8   :  { %v7640_v50 = vadd.f32 %v2581_v57, %v8286_v60  ;;  %v8391_v52 = vpop.f32.mrb[5].mxu1  ;;  %v210_v60 = vsel %vm8385_vm1, %v205_v44, %v175_v31  ;;  %vm8421_vm1 = vmand %vm194_vm13, %vm189_vm10  ;;  %vm196_vm10 = vcmp.lt.s32.totalorder %v186_v15, 0  ;;  %v5001_v31 = vld [vmem:[%s9003_s4] sm:$0xff] }
 0x1a9   :  { %v2763_v59 = vadd.f32 %v7639_v45, %v8378_v42  ;;  %vm215_vm0 = vcmp.lt.s32.totalorder %v210_v60, 16  ;;  %v209_v17 = vsel %vm8421_vm1, %v204_v7, %v164_v48  ;;  %vm131_vm1 = vcmp.lt.s32.totalorder %v8339_v61, 288 }
 0x1aa   :  { %v2764_v55 = vadd.f32 %v7640_v50, %v8378_v42  ;;  %v7546_v58 = vpop.f32.mrb[4].mxu0  ;;  %vm8444_vm7 = vmand %vm130_vm15, %vm215_vm0  ;;  %vm7846_vm0 = vmmov 0  }
 0x1ab   :  { %vm2773_vm12 = vcmp.ge.f32.partialorder %v2763_v59, 0.0  ;;  %v2783_v62 = vmul.f32 0.2, %v2763_v59  ;;  %v7641_v63 = vadd.f32 %v7546_v58, %v8300_v9  ;;  %v2656_v0 = vpop.f32.mrb[6].mxu1  ;;  %v2727_v1 = vpop.f32.mrb[5].mxu0  ;;  %7564 = vmatprep.mubr.msk.f32.mxu0 %vm7846_vm0, %v8472_v25 }
 0x1ac   :  { %vm2774_vm14 = vcmp.ge.f32.partialorder %v2764_v55, 0.0  ;;  %v2784_v3 = vmul.f32 0.2, %v2764_v55  ;;  %v8409_v4 = vadd.f32 %v2727_v1, %v8302_v11  ;;  %v2658_v5 = vpop.f32.mrb[7].mxu1  ;;  %v2765_v14 = vadd.f32 %v8378_v42, %v2656_v0 }
 0x1ad   :  { %v8412_v6 = vsel %vm2773_vm12, %v2763_v59, %v2783_v62  ;;  %v2766_v8 = vadd.f32 %v8378_v42, %v2658_v5  ;;  %vm214_vm12 = vcmp.lt.s32.totalorder %v209_v17, 16  ;;  %v2767_v22 = vadd.f32 %v7641_v63, %v8378_v42  ;;  %v2808_v62 = vld [vmem:[%s9004_s3] sm:$0xff] }
 0x1ae   :  { %v8418_v9 = vsel %vm8403_vm11, %v8412_v6, 0.0  ;;  %v8433_v13 = vsel %vm2774_vm14, %v2764_v55, %v2784_v3  ;;  %v2785_v20 = vmul.f32 0.2, %v2765_v14  ;;  %vm2775_vm13 = vcmp.ge.f32.partialorder %v2765_v14, 0.0  ;;  %vm201_vm14 = vmand %vm196_vm10, %vm191_vm9 }
 0x1af   :  { %vm2776_vm6 = vcmp.ge.f32.partialorder %v2766_v8, 0.0  ;;  %3064 = vrot.lane.b32.xlu0 %v8418_v9, %s7845_s11  ;;  %2825 = vrot.lane.b32.xlu1 %v8418_v9, %s7844_s1  ;;  %v2786_v16 = vmul.f32 0.2, %v2766_v8  ;;  %v2799_v18 = vsel %vm8429_vm2, %v8433_v13, 0.0  ;;  %vm8465_vm15 = vmand %vm129_vm8, %vm214_vm12  ;;  %v211_v51 = vsel %vm201_vm14, %v206_v21, %v186_v15 }
 0x1b0   :  { %v8469_v24 = vsel %vm2775_vm13, %v2765_v14, %v2785_v20  ;;  %v2787_v27 = vmul.f32 0.2, %v2767_v22  ;;  %vm2777_vm9 = vcmp.ge.f32.partialorder %v2767_v22, 0.0  ;;  %vm2835_vm8 = vcmask 146432  }
 0x1b1   :  { %v8453_v19 = vsel %vm2776_vm6, %v2766_v8, %v2786_v16  ;;  %v2800_v26 = vsel %vm8465_vm15, %v8469_v24, 0.0  ;;  %vm216_vm6 = vcmp.lt.s32.totalorder %v211_v51, 16  ;;  %vm2846_vm12 = vcmask 64512   ;;  %v7376_v16 = vld [vmem:[%s9004_s3 + $0x10] sm:$0xff] }
 0x1b2   :  { %v8458_v43 = vsel %vm8444_vm7, %v8453_v19, 0.0  ;;  %vm8485_vm10 = vmand %vm131_vm1, %vm216_vm6  ;;  %v8489_v29 = vsel %vm2777_vm9, %v2767_v22, %v2787_v27  ;;  %vm3074_vm13 = vcmask 154624   ;;  %vm3314_vm14 = vcmask 138240  }
 0x1b3   :  { %2827 = vrot.lane.b32.xlu1 %v2799_v18, %s7844_s1  ;;  %2831 = vrot.lane.b32.xlu0 %v8458_v43, %s7844_s1  ;;  %v2802_v61 = vsel %vm8485_vm10, %v8489_v29, 0.0  ;;  %vm3559_vm1 = vcmask 7168   ;;  %vm4282_vm6 = vcmask 908288  }
 0x1b7   :  { %3066 = vrot.lane.b32.xlu1 %v2799_v18, %s7845_s11  ;;  %3062 = vrot.lane.b32.xlu0 %v8472_v25, %s7845_s11 }
 0x1bb   :  { %2829 = vrot.lane.b32.xlu1 %v2800_v26, %s7844_s1  ;;  %3304 = vrot.lane.b32.xlu0 %v8418_v9, %s7847_s12 }
 0x1bf   :  { %3068 = vrot.lane.b32.xlu1 %v2800_v26, %s7845_s11  ;;  %3070 = vrot.lane.b32.xlu0 %v8458_v43, %s7845_s11 }
 0x1c3   :  { %2833 = vrot.lane.b32.xlu1 %v2802_v61, %s7844_s1  ;;  %3302 = vrot.lane.b32.xlu0 %v8472_v25, %s7847_s12 }
 0x1c7   :  { %3306 = vrot.lane.b32.xlu1 %v2799_v18, %s7847_s12  ;;  %3310 = vrot.lane.b32.xlu0 %v8458_v43, %s7847_s12 }
 0x1cb   :  { %3308 = vrot.lane.b32.xlu1 %v2800_v26, %s7847_s12  ;;  %3549 = vrot.lane.b32.xlu0 %v8418_v9, %s7848_s13 }
 0x1cf   :  { %3072 = vrot.lane.b32.xlu1 %v2802_v61, %s7845_s11  ;;  %3547 = vrot.lane.b32.xlu0 %v8472_v25, %s7848_s13 }
 0x1d3   :  { %3551 = vrot.lane.b32.xlu1 %v2799_v18, %s7848_s13  ;;  %3555 = vrot.lane.b32.xlu0 %v8458_v43, %s7848_s13 }
 0x1d7   :  { %3553 = vrot.lane.b32.xlu1 %v2800_v26, %s7848_s13  ;;  %4030 = vrot.lane.b32.xlu0 %v2800_v26, %s7836_s10 }
 0x1db   :  { %3312 = vrot.lane.b32.xlu1 %v2802_v61, %s7847_s12  ;;  %4032 = vrot.lane.b32.xlu0 %v8458_v43, %s7836_s10 }
 0x1df   :  { %4028 = vrot.lane.b32.xlu1 %v2799_v18, %s7836_s10  ;;  %4272 = vrot.lane.b32.xlu0 %v2799_v18, %s7849_s14 }
 0x1e3   :  { %4026 = vrot.lane.b32.xlu1 %v8418_v9, %s7836_s10  ;;  %4270 = vrot.lane.b32.xlu0 %v8418_v9, %s7849_s14 }
 0x1e7   :  { %4274 = vrot.lane.b32.xlu1 %v2800_v26, %s7849_s14  ;;  %4517 = vrot.lane.b32.xlu0 %v2799_v18, %s7837_s0 }
 0x1eb   :  { %4276 = vrot.lane.b32.xlu1 %v8458_v43, %s7849_s14  ;;  %4515 = vrot.lane.b32.xlu0 %v8418_v9, %s7837_s0 }
 0x1ef   :  { %4519 = vrot.lane.b32.xlu1 %v2800_v26, %s7837_s0  ;;  %4278 = vrot.lane.b32.xlu0 %v2802_v61, %s7849_s14 }
 0x1f3   :  { %4034 = vrot.lane.b32.xlu1 %v2802_v61, %s7836_s10  ;;  %4761 = vrot.lane.b32.xlu0 %v2799_v18, %s7838_s15 }
 0x1f7   :  { %4521 = vrot.lane.b32.xlu1 %v8458_v43, %s7837_s0  ;;  %4523 = vrot.lane.b32.xlu0 %v2802_v61, %s7837_s0 }
 0x1fb   :  { %3557 = vrot.lane.b32.xlu1 %v2802_v61, %s7848_s13  ;;  %4280 = vrot.lane.b32.xlu0 %v8536_v30, %s7849_s14 }
 0x1ff   :  { %4036 = vrot.lane.b32.xlu1 %v8536_v30, %s7836_s10  ;;  %4765 = vrot.lane.b32.xlu0 %v8458_v43, %s7838_s15 }
 0x203   :  { %4763 = vrot.lane.b32.xlu1 %v2800_v26, %s7838_s15  ;;  %4525 = vrot.lane.b32.xlu0 %v8536_v30, %s7837_s0 }
 0x207   :  { %4759 = vrot.lane.b32.xlu1 %v8418_v9, %s7838_s15  ;;  %5004 = vperm.xlu0 %7817, %v5001_v31  }
 0x20b   :  { %4767 = vrot.lane.b32.xlu1 %v2802_v61, %s7838_s15 }
 0x20f   :  { %4769 = vrot.lane.b32.xlu1 %v8536_v30, %s7838_s15 }
 0x213   :  { %5052 = vrot.lane.b32.xlu1 %v8472_v25, %s7844_s1 }
 0x217   :  { %5289 = vrot.lane.b32.xlu1 %v8472_v25, %s7845_s11 }
 0x221   :  { %v3065_v33 = vpop.permute.xlu0 %3064  ;;  %v2826_v35 = vpop.permute.xlu1 %2825 }
 0x222   :  { %v2836_v2 = vsel %vm2835_vm8, %v2824_v32, %v2826_v35  ;;  %v7380_v32 = vld [vmem:[%s9004_s3 + $0x18] sm:$0xff] }
 0x225   :  { %v2828_v36 = vpop.permute.xlu1 %2827  ;;  %v2832_v37 = vpop.permute.xlu0 %2831 }
 0x226   :  { %v2837_v39 = vsel %vm2835_vm8, %v2826_v35, %v2828_v36 }
 0x227   :  { %2850 = vmatprep.subr.mxu1 %v2837_v39 }
 0x228   :  { %2851 = vmatpush1.msra.mxu1 %v2836_v2 }
 0x229   :  { %v3067_v56 = vpop.permute.xlu1 %3066  ;;  %7370 = vmatmul.mubr.msk.f32.vlgmr.msra.gmra.mrb[10].mxu1 %vm2846_vm12, %v7369_v41  ;;  %v3063_v42 = vpop.permute.xlu0 %3062 }
 0x22a   :  { %2985 = vmatprep.mubr.f32.mxu1 %v8472_v25  ;;  %v3076_v54 = vsel %vm3074_vm13, %v3065_v33, %v3067_v56  ;;  %v3075_v55 = vsel %vm3074_vm13, %v3063_v42, %v3065_v33 }
 0x22d   :  { %v2830_v44 = vpop.permute.xlu1 %2829  ;;  %v3305_v45 = vpop.permute.xlu0 %3304 }
 0x22e   :  { %v2838_v57 = vsel %vm2835_vm8, %v2828_v36, %v2830_v44  ;;  %v2839_v47 = vsel %vm2835_vm8, %v2830_v44, %v2832_v37 }
 0x22f   :  { %2921 = vmatprep.subr.mxu1 %v2839_v47 }
 0x230   :  { %2922 = vmatpush1.msra.mxu1 %v2838_v57 }
 0x231   :  { %v3069_v48 = vpop.permute.xlu1 %3068  ;;  %7371 = vmatmul.mubr.msk.f32.vlgmr.msra.gmra.mrb[12].mxu1 %vm2846_vm12, %v7369_v41  ;;  %7547 = vmatprep.subr.mxu1 %v8472_v25  ;;  %v3071_v49 = vpop.permute.xlu0 %3070 }
 0x232   :  { %7549 = vmatprep.mubr.msk.f32.mxu1 %vm7846_vm0, %v8472_v25  ;;  %v3078_v60 = vsel %vm3074_vm13, %v3069_v48, %v3071_v49  ;;  %v3077_v0 = vsel %vm3074_vm13, %v3067_v56, %v3069_v48 }
 0x235   :  { %v2834_v50 = vpop.permute.xlu1 %2833  ;;  %v3303_v59 = vpop.permute.xlu0 %3302 }
 0x236   :  { %v2840_v53 = vsel %vm2835_vm8, %v2832_v37, %v2834_v50  ;;  %v3315_v12 = vsel %vm3314_vm14, %v3303_v59, %v3305_v45 }
 0x237   :  { %7548 = vmatpush3.msra.mxu1 %v2840_v53 }
 0x238   :  { %7550 = vmatmul.mubr.msk.f32.vlgmr.msra.gmra.mrb[14].mxu1 %vm2846_vm12, %v7369_v41  ;;  %3088 = vmatprep.subr.mxu1 %v3076_v54  ;;  %v7384_v41 = vld [vmem:[%s9004_s3 + $0x20] sm:$0xff] }
 0x239   :  { %3089 = vmatpush1.msra.mxu1 %v3075_v55  ;;  %v3307_v58 = vpop.permute.xlu1 %3306  ;;  %3152 = vmatprep.mubr.f32.mxu1 %v8472_v25  ;;  %v3311_v63 = vpop.permute.xlu0 %3310  ;;  %v7392_v55 = vld [vmem:[%s9004_s3 + $0x30] sm:$0xff] }
 0x23a   :  { %3159 = vmatprep.subr.mxu1 %v3078_v60  ;;  %v3316_v9 = vsel %vm3314_vm14, %v3305_v45, %v3307_v58 }
 0x23c   :  { %7373 = vmatmul.mubr.msk.f32.vlgmr.msra.gmra.mrb[10].mxu1 %vm2846_vm12, %v2808_v62 }
 0x23d   :  { %3160 = vmatpush1.msra.mxu1 %v3077_v0  ;;  %v3309_v1 = vpop.permute.xlu1 %3308  ;;  %3223 = vmatprep.mubr.f32.mxu1 %v8472_v25  ;;  %v3550_v3 = vpop.permute.xlu0 %3549 }
 0x23e   :  { %7552 = vmatprep.subr.mxu1 %v8472_v25  ;;  %v3318_v15 = vsel %vm3314_vm14, %v3309_v1, %v3311_v63  ;;  %v3317_v18 = vsel %vm3314_vm14, %v3307_v58, %v3309_v1 }
 0x240   :  { %7374 = vmatmul.mubr.msk.f32.vlgmr.msra.gmra.mrb[12].mxu1 %vm2846_vm12, %v2808_v62 }
 0x241   :  { %v3073_v5 = vpop.permute.xlu1 %3072  ;;  %7554 = vmatprep.mubr.msk.f32.mxu1 %vm7846_vm0, %v8472_v25  ;;  %v3548_v7 = vpop.permute.xlu0 %3547 }
 0x242   :  { %v3079_v8 = vsel %vm3074_vm13, %v3071_v49, %v3073_v5  ;;  %v3560_v27 = vsel %vm3559_vm1, %v3548_v7, %v3550_v3 }
 0x243   :  { %7553 = vmatpush3.msra.mxu1 %v3079_v8  ;;  %v7396_v8 = vld [vmem:[%s9004_s3 + $0x38] sm:$0xff] }
 0x244   :  { %7555 = vmatmul.mubr.msk.f32.vlgmr.msra.gmra.mrb[16].mxu1 %vm2846_vm12, %v2808_v62  ;;  %3328 = vmatprep.subr.mxu1 %v3316_v9 }
 0x245   :  { %3329 = vmatpush1.msra.mxu1 %v3315_v12  ;;  %v3552_v14 = vpop.permute.xlu1 %3551  ;;  %3392 = vmatprep.mubr.f32.mxu1 %v8472_v25  ;;  %v8598_v17 = vpop.permute.xlu0 %3555 }
 0x246   :  { %3399 = vmatprep.subr.mxu1 %v3318_v15  ;;  %v3561_v26 = vsel %vm3559_vm1, %v3550_v3, %v3552_v14 }
 0x248   :  { %7377 = vmatmul.mubr.msk.f32.vlgmr.msra.gmra.mrb[10].mxu1 %vm2846_vm12, %v7376_v16 }
 0x249   :  { %3400 = vmatpush1.msra.mxu1 %v3317_v18  ;;  %v3554_v20 = vpop.permute.xlu1 %3553  ;;  %3463 = vmatprep.mubr.f32.mxu1 %v8472_v25  ;;  %v4031_v43 = vpop.permute.xlu0 %4030 }
 0x24a   :  { %7557 = vmatprep.subr.mxu1 %v8472_v25  ;;  %v3563_v31 = vsel %vm3559_vm1, %v3554_v20, %v8598_v17  ;;  %v3562_v35 = vsel %vm3559_vm1, %v3552_v14, %v3554_v20  ;;  %v7400_v20 = vld [vmem:[%s9004_s3 + $0x40] sm:$0xff] }
 0x24c   :  { %7378 = vmatmul.mubr.msk.f32.vlgmr.msra.gmra.mrb[12].mxu1 %vm2846_vm12, %v7376_v16 }
 0x24d   :  { %v3313_v21 = vpop.permute.xlu1 %3312  ;;  %7559 = vmatprep.mubr.msk.f32.mxu1 %vm7846_vm0, %v8472_v25  ;;  %v4033_v22 = vpop.permute.xlu0 %4032 }
 0x24e   :  { %v3319_v51 = vsel %vm3314_vm14, %v3311_v63, %v3313_v21  ;;  %v4040_v48 = vsel %vm252_vm3, %v4031_v43, %v4033_v22 }
 0x24f   :  { %7558 = vmatpush3.msra.mxu1 %v3319_v51 }
 0x250   :  { %7560 = vmatmul.mubr.msk.f32.vlgmr.msra.gmra.mrb[18].mxu1 %vm2846_vm12, %v7376_v16  ;;  %3573 = vmatprep.subr.mxu1 %v3561_v26 }
 0x251   :  { %3574 = vmatpush1.msra.mxu1 %v3560_v27  ;;  %v4029_v61 = vpop.permute.xlu1 %4028  ;;  %3637 = vmatprep.mubr.f32.mxu1 %v8472_v25  ;;  %v4273_v33 = vpop.permute.xlu0 %4272 }
 0x252   :  { %3644 = vmatprep.subr.mxu1 %v3563_v31 }
 0x254   :  { %7381 = vmatmul.mubr.msk.f32.vlgmr.msra.gmra.mrb[10].mxu1 %vm2846_vm12, %v7380_v32 }
 0x255   :  { %3645 = vmatpush1.msra.mxu1 %v3562_v35  ;;  %v4027_v36 = vpop.permute.xlu1 %4026  ;;  %3708 = vmatprep.mubr.f32.mxu1 %v8472_v25  ;;  %v4271_v37 = vpop.permute.xlu0 %4270 }
 0x256   :  { %7824 = vmatprep.subr.msk.mxu1 %vm8429_vm2, %v8433_v13  ;;  %v4038_v42 = vsel %vm252_vm3, %v4027_v36, %v4029_v61  ;;  %v4283_v50 = vsel %vm4282_vm6, %v4271_v37, %v4273_v33 }
 0x258   :  { %7382 = vmatmul.mubr.msk.f32.vlgmr.msra.gmra.mrb[12].mxu1 %vm2846_vm12, %v7380_v32 }
 0x259   :  { %7825 = vmatpush1.msk.msra.mxu1 %vm8403_vm11, %v8412_v6  ;;  %v4275_v39 = vpop.permute.xlu1 %4274  ;;  %3859 = vmatprep.mubr.f32.mxu1 %v8472_v25  ;;  %v4518_v2 = vpop.permute.xlu0 %4517  ;;  %v4039_v6 = vsel %vm252_vm3, %v4029_v61, %v4031_v43 }
 0x25a   :  { %7826 = vmatprep.subr.msk.mxu1 %vm8444_vm7, %v8453_v19  ;;  %v7388_v19 = vld [vmem:[%s9004_s3 + $0x28] sm:$0xff]  ;;  %v4284_v49 = vsel %vm4282_vm6, %v4273_v33, %v4275_v39 }
 0x25c   :  { %7385 = vmatmul.mubr.msk.f32.vlgmr.msra.gmra.mrb[10].mxu1 %vm2846_vm12, %v7384_v41 }
 0x25d   :  { %7827 = vmatpush1.msk.msra.mxu1 %vm8465_vm15, %v8469_v24  ;;  %v4277_v13 = vpop.permute.xlu1 %4276  ;;  %3930 = vmatprep.mubr.f32.mxu1 %v8472_v25  ;;  %v4516_v56 = vpop.permute.xlu0 %4515 }
 0x25e   :  { %4051 = vmatprep.subr.mxu1 %v4039_v6  ;;  %v4285_v58 = vsel %vm4282_vm6, %v4275_v39, %v4277_v13  ;;  %v4527_v1 = vsel %vm9009_vm4, %v4516_v56, %v4518_v2 }
 0x260   :  { %7386 = vmatmul.mubr.msk.f32.vlgmr.msra.gmra.mrb[12].mxu1 %vm2846_vm12, %v7384_v41 }
 0x261   :  { %4052 = vmatpush1.msra.mxu1 %v4038_v42  ;;  %v4520_v44 = vpop.permute.xlu1 %4519  ;;  %4115 = vmatprep.mubr.f32.mxu1 %v8472_v25  ;;  %v4279_v24 = vpop.permute.xlu0 %4278 }
 0x262   :  { %v4286_v54 = vsel %vm4282_vm6, %v4277_v13, %v4279_v24  ;;  %v4528_v0 = vsel %vm9009_vm4, %v4518_v2, %v4520_v44 }
 0x264   :  { %7389 = vmatmul.mubr.msk.f32.vlgmr.msra.gmra.mrb[10].mxu1 %vm2846_vm12, %v7388_v19 }
 0x265   :  { %v4035_v45 = vpop.permute.xlu1 %4034  ;;  %4186 = vmatprep.mubr.f32.mxu1 %v8472_v25  ;;  %v4762_v57 = vpop.permute.xlu0 %4761 }
 0x266   :  { %v4041_v47 = vsel %vm252_vm3, %v4033_v22, %v4035_v45 }
 0x267   :  { %4122 = vmatprep.subr.mxu1 %v4041_v47 }
 0x268   :  { %4123 = vmatpush1.msra.mxu1 %v4040_v48 }
 0x269   :  { %7390 = vmatmul.mubr.msk.f32.vlgmr.msra.gmra.mrb[12].mxu1 %vm2846_vm12, %v7388_v19  ;;  %4296 = vmatprep.subr.mxu1 %v4284_v49  ;;  %v4522_v59 = vpop.permute.xlu1 %4521  ;;  %v4524_v53 = vpop.permute.xlu0 %4523 }
 0x26a   :  { %4297 = vmatpush1.msra.mxu1 %v4283_v50  ;;  %4360 = vmatprep.mubr.f32.mxu1 %v8472_v25  ;;  %v4530_v7 = vsel %vm9009_vm4, %v4522_v59, %v4524_v53 }
 0x26b   :  { %4367 = vmatprep.subr.mxu1 %v4286_v54 }
 0x26d   :  { %7393 = vmatmul.mubr.msk.f32.vlgmr.msra.gmra.mrb[10].mxu1 %vm2846_vm12, %v7392_v55  ;;  %v3558_v60 = vpop.permute.xlu1 %3557  ;;  %v4281_v62 = vpop.permute.xlu0 %4280 }
 0x26e   :  { %4368 = vmatpush1.msra.mxu1 %v4285_v58  ;;  %v3564_v63 = vsel %vm3559_vm1, %v8598_v17, %v3558_v60  ;;  %4431 = vmatprep.mubr.f32.mxu1 %v8472_v25  ;;  %v4287_v15 = vsel %vm4282_vm6, %v4279_v24, %v4281_v62 }
 0x26f   :  { %4540 = vmatprep.subr.mxu1 %v4528_v0  ;;  %7563 = vmatpush3.msra.mxu0 %v3564_v63 }
 0x270   :  { %7565 = vmatmul.mubr.msk.f32.vlgmr.msra.gmra.mrb[6].mxu0 %vm2846_vm12, %v7380_v32  ;;  %7567 = vmatprep.subr.mxu0 %v8472_v25 }
 0x271   :  { %7828 = vmatpush3.msk.msra.mxu0 %vm8485_vm10, %v8489_v29  ;;  %7394 = vmatmul.mubr.msk.f32.vlgmr.msra.gmra.mrb[12].mxu1 %vm2846_vm12, %v7392_v55  ;;  %v4037_v3 = vpop.permute.xlu1 %4036  ;;  %v4766_v9 = vpop.permute.xlu0 %4765  ;;  %v4529_v29 = vsel %vm9009_vm4, %v4520_v44, %v4522_v59 }
 0x272   :  { %4541 = vmatpush1.msra.mxu1 %v4527_v1  ;;  %v4042_v5 = vsel %vm252_vm3, %v4035_v45, %v4037_v3  ;;  %7569 = vmatprep.mubr.msk.f32.mxu0 %vm7846_vm0, %v8472_v25 }
 0x273   :  { %4611 = vmatprep.subr.mxu1 %v4530_v7  ;;  %7572 = vmatprep.subr.mxu0 %v8472_v25 }
 0x274   :  { %7570 = vmatmul.mubr.msk.f32.vlgmr.msra.gmra.mrb[8].mxu0 %vm2846_vm12, %v7384_v41  ;;  %4604 = vmatprep.mubr.f32.mxu1 %v8472_v25 }
 0x275   :  { %7573 = vmatpush3.msra.mxu0 %v4042_v5  ;;  %7397 = vmatmul.mubr.msk.f32.vlgmr.msra.gmra.mrb[10].mxu1 %vm2846_vm12, %v7396_v8  ;;  %v4764_v12 = vpop.permute.xlu1 %4763  ;;  %v4526_v16 = vpop.permute.xlu0 %4525 }
 0x276   :  { %4612 = vmatpush1.msra.mxu1 %v4529_v29  ;;  %7574 = vmatprep.mubr.msk.f32.mxu0 %vm7846_vm0, %v8472_v25  ;;  %v4772_v14 = vsel %vm9008_vm5, %v4762_v57, %v4764_v12  ;;  %v4531_v43 = vsel %vm9009_vm4, %v4524_v53, %v4526_v16  ;;  %v4773_v51 = vsel %vm9008_vm5, %v4764_v12, %v4766_v9 }
 0x277   :  { %7577 = vmatprep.subr.mxu0 %v8472_v25  ;;  %4784 = vmatprep.subr.mxu1 %v4772_v14 }
 0x278   :  { %7575 = vmatmul.mubr.msk.f32.vlgmr.msra.gmra.mrb[10].mxu0 %vm2846_vm12, %v7388_v19  ;;  %4675 = vmatprep.mubr.f32.mxu1 %v8472_v25 }
 0x279   :  { %7578 = vmatpush3.msra.mxu0 %v4287_v15  ;;  %7398 = vmatmul.mubr.msk.f32.vlgmr.msra.gmra.mrb[12].mxu1 %vm2846_vm12, %v7396_v8  ;;  %v4760_v17 = vpop.permute.xlu1 %4759 }
 0x27a   :  { %v4771_v18 = vsel %vm9008_vm5, %v4760_v17, %v4762_v57  ;;  %7579 = vmatprep.mubr.msk.f32.mxu0 %vm7846_vm0, %v8472_v25  ;;  %7582 = vmatprep.subr.mxu0 %v8472_v25 }
 0x27b   :  { %4785 = vmatpush1.msra.mxu1 %v4771_v18  ;;  %4848 = vmatprep.mubr.f32.mxu1 %v8472_v25 }
 0x27c   :  { %7580 = vmatmul.mubr.msk.f32.vlgmr.msra.gmra.mrb[12].mxu0 %vm2846_vm12, %v7392_v55 }
 0x27d   :  { %7583 = vmatpush3.msra.mxu0 %v4531_v43  ;;  %7401 = vmatmul.mubr.msk.f32.vlgmr.msra.gmra.mrb[10].mxu1 %vm2846_vm12, %v7400_v20  ;;  %v4768_v21 = vpop.permute.xlu1 %4767 }
 0x27e   :  { %7584 = vmatprep.mubr.msk.f32.mxu0 %vm7846_vm0, %v8472_v25  ;;  %v4774_v22 = vsel %vm9008_vm5, %v4766_v9, %v4768_v21  ;;  %4919 = vmatprep.mubr.f32.mxu1 %v8472_v25 }
 0x27f   :  { %4855 = vmatprep.subr.mxu1 %v4774_v22  ;;  %7587 = vmatprep.subr.mxu0 %v8472_v25 }
 0x280   :  { %7585 = vmatmul.mubr.msk.f32.vlgmr.msra.gmra.mrb[14].mxu0 %vm2846_vm12, %v7396_v8  ;;  %4856 = vmatpush1.msra.mxu1 %v4773_v51 }
 0x281   :  { %7402 = vmatmul.mubr.msk.f32.vlgmr.msra.gmra.mrb[12].mxu1 %vm2846_vm12, %v7400_v20  ;;  %v4770_v26 = vpop.permute.xlu1 %4769  ;;  %7589 = vmatprep.mubr.msk.f32.mxu0 %vm7846_vm0, %v8472_v25 }
 0x282   :  { %v4775_v27 = vsel %vm9008_vm5, %v4768_v21, %v4770_v26  ;;  %7602 = vmatprep.subr.mxu1 %v8472_v25  ;;  %7604 = vmatprep.mubr.msk.f32.mxu1 %vm7846_vm0, %v8472_v25 }
 0x283   :  { %7588 = vmatpush3.msra.mxu0 %v4775_v27  ;;  %v2746_v27 = vld [vmem:[%s9002_s2] sm:$0xff] }
 0x284   :  { %7590 = vmatmul.mubr.msk.f32.vlgmr.msra.gmra.mrb[16].mxu0 %vm2846_vm12, %v7400_v20 }
 0x285   :  { %5141 = vmatprep.mubr.f32.mxu0 %v8472_v25 }
 0x286   :  { %v5005_v45 = vpop.permute.xlu0 %5004 }
 0x30b   :  { %v3058_v61 = vpop.f32.mrb[14].mxu1 }
 0x30c   :  { %v7551_v31 = vpop.f32.mrb[15].mxu1 }
 0x30d   :  { %v5053_v31 = vpop.permute.xlu1 %5052 }
 0x317   :  { %v3296_v32 = vpop.f32.mrb[16].mxu1 }
 0x318   :  { %v3297_v33 = vadd.f32 %v3296_v32, %v3058_v61  ;;  %v7556_v35 = vpop.f32.mrb[17].mxu1  ;;  %v7224_v61 = vld [vmem:[%s9005_s6] sm:$0xff]  ;;  %v5290_v32 = vpop.permute.xlu1 %5289 }
 0x323   :  { %v3536_v36 = vpop.f32.mrb[18].mxu1 }
 0x324   :  { %v3544_v37 = vadd.f32 %v3536_v36, %v3297_v33  ;;  %v7561_v39 = vpop.f32.mrb[19].mxu1 }
 0x343   :  { %v3781_v41 = vpop.f32.mrb[6].mxu0 }
 0x344   :  { %v3789_v2 = vadd.f32 %v3781_v41, %v3544_v37  ;;  %v7566_v6 = vpop.f32.mrb[7].mxu0 }
 0x347   :  { %v4003_v13 = vpop.f32.mrb[8].mxu0 }
 0x348   :  { %v4011_v56 = vadd.f32 %v4003_v13, %v3789_v2  ;;  %v7571_v42 = vpop.f32.mrb[9].mxu0 }
 0x34b   :  { %v4259_v44 = vpop.f32.mrb[10].mxu0 }
 0x34c   :  { %v4267_v19 = vadd.f32 %v4259_v44, %v4011_v56  ;;  %v7576_v24 = vpop.f32.mrb[11].mxu0 }
 0x34f   :  { %v4504_v57 = vpop.f32.mrb[12].mxu0 }
 0x350   :  { %v4512_v47 = vadd.f32 %v4504_v57, %v4267_v19  ;;  %v7581_v48 = vpop.f32.mrb[13].mxu0  ;;  %v4850_v49 = vpop.f32.mrb[10].mxu1 }
 0x351   :  { %v5007_v50 = vadd.f32 %v5005_v45, %v4850_v49  ;;  %v4852_v59 = vpop.f32.mrb[11].mxu1 }
 0x352   :  { %v5008_v53 = vadd.f32 %v5005_v45, %v4852_v59 }
 0x353   :  { %vm5012_vm9 = vcmp.ge.f32.partialorder %v5007_v50, 0.0  ;;  %v5017_v54 = vmul.f32 0.2, %v5007_v50  ;;  %v4748_v55 = vpop.f32.mrb[14].mxu0 }
 0x354   :  { %vm5013_vm5 = vcmp.ge.f32.partialorder %v5008_v53, 0.0  ;;  %v5018_v58 = vmul.f32 0.2, %v5008_v53  ;;  %v4756_v60 = vadd.f32 %v4748_v55, %v4512_v47  ;;  %v7586_v62 = vpop.f32.mrb[15].mxu0  ;;  %v4921_v63 = vpop.f32.mrb[12].mxu1 }
 0x355   :  { %v8718_v0 = vsel %vm5012_vm9, %v5007_v50, %v5017_v54  ;;  %v5009_v1 = vadd.f32 %v5005_v45, %v4921_v63  ;;  %v4923_v3 = vpop.f32.mrb[13].mxu1  ;;  %v5037_v62 = vld [vmem:[%s9006_s5] sm:$0xff] }
 0x356   :  { %v5027_v5 = vsel %vm8403_vm11, %v8718_v0, 0.0  ;;  %v8723_v7 = vsel %vm5013_vm5, %v5008_v53, %v5018_v58  ;;  %v5010_v8 = vadd.f32 %v5005_v45, %v4923_v3 }
 0x357   :  { %v5028_v9 = vsel %vm8429_vm2, %v8723_v7, 0.0  ;;  %vm5014_vm4 = vcmp.ge.f32.partialorder %v5009_v1, 0.0  ;;  %v5019_v29 = vmul.f32 0.2, %v5009_v1  ;;  %v4992_v12 = vpop.f32.mrb[16].mxu0  ;;  %5054 = vrot.lane.b32.xlu1 %v5027_v5, %s7844_s1 }
 0x358   :  { %vm5015_vm9 = vcmp.ge.f32.partialorder %v5010_v8, 0.0  ;;  %v5020_v14 = vmul.f32 0.2, %v5010_v8  ;;  %v5000_v15 = vadd.f32 %v4992_v12, %v4756_v60  ;;  %v7591_v16 = vpop.f32.mrb[17].mxu0 }
 0x359   :  { %v8729_v17 = vsel %vm5014_vm4, %v5009_v1, %v5019_v29 }
 0x35a   :  { %v5029_v18 = vsel %vm8465_vm15, %v8729_v17, 0.0  ;;  %v8734_v20 = vsel %vm5015_vm9, %v5010_v8, %v5020_v14  ;;  %v5011_v43 = vadd.f32 %v5005_v45, %v5000_v15 }
 0x35b   :  { %v5030_v21 = vsel %vm8444_vm7, %v8734_v20, 0.0  ;;  %5291 = vrot.lane.b32.xlu1 %v5027_v5, %s7845_s11 }
 0x35c   :  { %vm5016_vm5 = vcmp.ge.f32.partialorder %v5011_v43, 0.0  ;;  %v5021_v22 = vmul.f32 0.2, %v5011_v43 }
 0x35e   :  { %v8740_v51 = vsel %vm5016_vm5, %v5011_v43, %v5021_v22 }
 0x35f   :  { %v5031_v26 = vsel %vm8485_vm10, %v8740_v51, 0.0  ;;  %5530 = vrot.lane.b32.xlu1 %v5027_v5, %s7847_s12 }
 0x360   :  { %5062 = vrot.lane.b32.xlu0 %v5031_v26, %s7844_s1 }
 0x363   :  { %5060 = vrot.lane.b32.xlu1 %v5030_v21, %s7844_s1 }
 0x364   :  { %5299 = vrot.lane.b32.xlu0 %v5031_v26, %s7845_s11 }
 0x367   :  { %5528 = vrot.lane.b32.xlu1 %v8472_v25, %s7847_s12 }
 0x368   :  { %5056 = vrot.lane.b32.xlu0 %v5028_v9, %s7844_s1 }
 0x36b   :  { %5776 = vrot.lane.b32.xlu1 %v5028_v9, %s7848_s13 }
 0x36c   :  { %5293 = vrot.lane.b32.xlu0 %v5028_v9, %s7845_s11 }
 0x36f   :  { %5297 = vrot.lane.b32.xlu1 %v5030_v21, %s7845_s11 }
 0x370   :  { %5532 = vrot.lane.b32.xlu0 %v5028_v9, %s7847_s12 }
 0x373   :  { %5778 = vrot.lane.b32.xlu1 %v5029_v18, %s7848_s13 }
 0x374   :  { %5058 = vrot.lane.b32.xlu0 %v5029_v18, %s7844_s1 }
 0x377   :  { %6252 = vrot.lane.b32.xlu1 %v5028_v9, %s7836_s10 }
 0x378   :  { %5295 = vrot.lane.b32.xlu0 %v5029_v18, %s7845_s11 }
 0x37b   :  { %5536 = vrot.lane.b32.xlu1 %v5030_v21, %s7847_s12 }
 0x37c   :  { %5534 = vrot.lane.b32.xlu0 %v5029_v18, %s7847_s12 }
 0x37f   :  { %6250 = vrot.lane.b32.xlu1 %v5027_v5, %s7836_s10 }
 0x380   :  { %5774 = vrot.lane.b32.xlu0 %v5027_v5, %s7848_s13 }
 0x383   :  { %5782 = vrot.lane.b32.xlu1 %v5031_v26, %s7848_s13 }
 0x384   :  { %5772 = vrot.lane.b32.xlu0 %v8472_v25, %s7848_s13 }
 0x387   :  { %6498 = vrot.lane.b32.xlu1 %v5029_v18, %s7849_s14 }
 0x388   :  { %6254 = vrot.lane.b32.xlu0 %v5029_v18, %s7836_s10 }
 0x38b   :  { %6260 = vrot.lane.b32.xlu1 %v8536_v30, %s7836_s10 }
 0x38c   :  { %5538 = vrot.lane.b32.xlu0 %v5031_v26, %s7847_s12 }
 0x38f   :  { %6742 = vrot.lane.b32.xlu1 %v5029_v18, %s7837_s0 }
 0x390   :  { %6258 = vrot.lane.b32.xlu0 %v5031_v26, %s7836_s10 }
 0x393   :  { %6256 = vrot.lane.b32.xlu1 %v5030_v21, %s7836_s10 }
 0x394   :  { %5780 = vrot.lane.b32.xlu0 %v5030_v21, %s7848_s13 }
 0x397   :  { %6504 = vrot.lane.b32.xlu1 %v8536_v30, %s7849_s14 }
 0x398   :  { %6496 = vrot.lane.b32.xlu0 %v5028_v9, %s7849_s14 }
 0x39b   :  { %6500 = vrot.lane.b32.xlu1 %v5030_v21, %s7849_s14 }
 0x39c   :  { %6494 = vrot.lane.b32.xlu0 %v5027_v5, %s7849_s14 }
 0x39f   :  { %6746 = vrot.lane.b32.xlu1 %v5031_v26, %s7837_s0 }
 0x3a0   :  { %6502 = vrot.lane.b32.xlu0 %v5031_v26, %s7849_s14 }
 0x3a3   :  { %6984 = vrot.lane.b32.xlu1 %v5028_v9, %s7838_s15 }
 0x3a4   :  { %6740 = vrot.lane.b32.xlu0 %v5028_v9, %s7837_s0 }
 0x3a7   :  { %6982 = vrot.lane.b32.xlu1 %v5027_v5, %s7838_s15 }
 0x3a8   :  { %6738 = vrot.lane.b32.xlu0 %v5027_v5, %s7837_s0 }
 0x3ab   :  { %6990 = vrot.lane.b32.xlu1 %v5031_v26, %s7838_s15 }
 0x3ac   :  { %6748 = vrot.lane.b32.xlu0 %v8536_v30, %s7837_s0 }
 0x3af   :  { %2750 = vperm.xlu1 %7818, %v2746_v27  }
 0x3b0   :  { %6986 = vrot.lane.b32.xlu0 %v5029_v18, %s7838_s15  ;;  %v7411_v18 = vld [vmem:[%s9006_s5 + $0x10] sm:$0xff] }
 0x3b4   :  { %6744 = vrot.lane.b32.xlu0 %v5030_v21, %s7837_s0 }
 0x3b8   :  { %6988 = vrot.lane.b32.xlu0 %v5030_v21, %s7838_s15 }
 0x3bc   :  { %6992 = vrot.lane.b32.xlu0 %v8536_v30, %s7838_s15  ;;  %v7404_v30 = vld [vmem:[%s9006_s5 + $0x8] sm:$0xff] }
 0x3c0   :  { %7227 = vperm.xlu0 %7817, %v7224_v61  }
 0x3c9   :  { %v5055_v33 = vpop.permute.xlu1 %5054 }
 0x3ca   :  { %v5064_v56 = vsel %vm2835_vm8, %v5053_v31, %v5055_v33 }
 0x3cd   :  { %v5292_v35 = vpop.permute.xlu1 %5291 }
 0x3ce   :  { %v5301_v55 = vsel %vm3074_vm13, %v5290_v32, %v5292_v35 }
 0x3d1   :  { %v5531_v36 = vpop.permute.xlu1 %5530 }
 0x3d2   :  { %v5063_v37 = vpop.permute.xlu0 %5062 }
 0x3d5   :  { %v5061_v39 = vpop.permute.xlu1 %5060 }
 0x3d6   :  { %v5300_v41 = vpop.permute.xlu0 %5299  ;;  %v5068_v50 = vsel %vm2835_vm8, %v5061_v39, %v5063_v37 }
 0x3d9   :  { %v5529_v2 = vpop.permute.xlu1 %5528 }
 0x3da   :  { %v5057_v6 = vpop.permute.xlu0 %5056  ;;  %v5540_v14 = vsel %vm3314_vm14, %v5529_v2, %v5531_v36 }
 0x3db   :  { %v5065_v13 = vsel %vm2835_vm8, %v5055_v33, %v5057_v6  ;;  %v7415_v33 = vld [vmem:[%s9006_s5 + $0x18] sm:$0xff] }
 0x3dc   :  { %5077 = vmatprep.subr.mxu0 %v5065_v13 }
 0x3dd   :  { %v8806_v42 = vpop.permute.xlu1 %5776  ;;  %5078 = vmatpush1.msra.mxu0 %v5064_v56 }
 0x3de   :  { %v5294_v44 = vpop.permute.xlu0 %5293  ;;  %7405 = vmatmul.mubr.msk.f32.vlgmr.msra.gmra.mrb[18].mxu0 %vm2846_vm12, %v7404_v30 }
 0x3df   :  { %5212 = vmatprep.mubr.f32.mxu0 %v8472_v25  ;;  %v5302_v53 = vsel %vm3074_vm13, %v5292_v35, %v5294_v44 }
 0x3e1   :  { %v5298_v19 = vpop.permute.xlu1 %5297 }
 0x3e2   :  { %v5533_v24 = vpop.permute.xlu0 %5532  ;;  %v5305_v8 = vsel %vm3074_vm13, %v5298_v19, %v5300_v41 }
 0x3e3   :  { %v5541_v29 = vsel %vm3314_vm14, %v5531_v36, %v5533_v24 }
 0x3e5   :  { %v8810_v45 = vpop.permute.xlu1 %5778 }
 0x3e6   :  { %v5059_v57 = vpop.permute.xlu0 %5058  ;;  %v5786_v41 = vsel %vm3559_vm1, %v8806_v42, %v8810_v45 }
 0x3e7   :  { %v5066_v47 = vsel %vm2835_vm8, %v5057_v6, %v5059_v57  ;;  %v5067_v48 = vsel %vm2835_vm8, %v5059_v57, %v5061_v39  ;;  %v7419_v6 = vld [vmem:[%s9006_s5 + $0x20] sm:$0xff] }
 0x3e8   :  { %5148 = vmatprep.subr.mxu0 %v5067_v48 }
 0x3e9   :  { %v8814_v49 = vpop.permute.xlu1 %6252  ;;  %5149 = vmatpush1.msra.mxu0 %v5066_v47 }
 0x3ea   :  { %7406 = vmatmul.mubr.msk.f32.vlgmr.msra.gmra.mrb[20].mxu0 %vm2846_vm12, %v7404_v30  ;;  %7592 = vmatprep.subr.mxu0 %v8472_v25  ;;  %v5296_v59 = vpop.permute.xlu0 %5295 }
 0x3eb   :  { %7593 = vmatpush3.msra.mxu0 %v5068_v50  ;;  %7594 = vmatprep.mubr.msk.f32.mxu0 %vm7846_vm0, %v8472_v25  ;;  %v5304_v60 = vsel %vm3074_vm13, %v5296_v59, %v5298_v19  ;;  %v5303_v1 = vsel %vm3074_vm13, %v5294_v44, %v5296_v59  ;;  %v7431_v50 = vld [vmem:[%s9006_s5 + $0x38] sm:$0xff] }
 0x3ec   :  { %5314 = vmatprep.subr.mxu0 %v5302_v53 }
 0x3ed   :  { %v5537_v54 = vpop.permute.xlu1 %5536 }
 0x3ee   :  { %7595 = vmatmul.mubr.msk.f32.vlgmr.msra.gmra.mrb[22].mxu0 %vm2846_vm12, %v7404_v30  ;;  %v5535_v58 = vpop.permute.xlu0 %5534 }
 0x3ef   :  { %5315 = vmatpush1.msra.mxu0 %v5301_v55  ;;  %5378 = vmatprep.mubr.f32.mxu0 %v8472_v25  ;;  %v5543_v16 = vsel %vm3314_vm14, %v5535_v58, %v5537_v54  ;;  %v5542_v21 = vsel %vm3314_vm14, %v5533_v24, %v5535_v58 }
 0x3f0   :  { %5385 = vmatprep.subr.mxu0 %v5304_v60 }
 0x3f1   :  { %v8829_v63 = vpop.permute.xlu1 %6250 }
 0x3f2   :  { %7408 = vmatmul.mubr.msk.f32.vlgmr.msra.gmra.mrb[18].mxu0 %vm2846_vm12, %v5037_v62  ;;  %v5775_v3 = vpop.permute.xlu0 %5774  ;;  %v6262_v23 = vsel %vm252_vm3, %v8829_v63, %v8814_v49 }
 0x3f3   :  { %5386 = vmatpush1.msra.mxu0 %v5303_v1  ;;  %5449 = vmatprep.mubr.f32.mxu0 %v8472_v25  ;;  %v5785_v27 = vsel %vm3559_vm1, %v5775_v3, %v8806_v42 }
 0x3f4   :  { %7597 = vmatprep.subr.mxu0 %v8472_v25 }
 0x3f5   :  { %v5783_v5 = vpop.permute.xlu1 %5782 }
 0x3f6   :  { %7409 = vmatmul.mubr.msk.f32.vlgmr.msra.gmra.mrb[20].mxu0 %vm2846_vm12, %v5037_v62  ;;  %v5773_v9 = vpop.permute.xlu0 %5772 }
 0x3f7   :  { %7598 = vmatpush3.msra.mxu0 %v5305_v8  ;;  %7599 = vmatprep.mubr.msk.f32.mxu0 %vm7846_vm0, %v8472_v25  ;;  %v5784_v31 = vsel %vm3559_vm1, %v5773_v9, %v5775_v3  ;;  %v7435_v9 = vld [vmem:[%s9006_s5 + $0x40] sm:$0xff] }
 0x3f8   :  { %5553 = vmatprep.subr.mxu0 %v5541_v29 }
 0x3f9   :  { %v8840_v12 = vpop.permute.xlu1 %6498 }
 0x3fa   :  { %7600 = vmatmul.mubr.msk.f32.vlgmr.msra.gmra.mrb[24].mxu0 %vm2846_vm12, %v5037_v62  ;;  %v8844_v15 = vpop.permute.xlu0 %6254 }
 0x3fb   :  { %5554 = vmatpush1.msra.mxu0 %v5540_v14  ;;  %5617 = vmatprep.mubr.f32.mxu0 %v8472_v25  ;;  %v6263_v40 = vsel %vm252_vm3, %v8814_v49, %v8844_v15 }
 0x3fc   :  { %5624 = vmatprep.subr.mxu0 %v5543_v16 }
 0x3fd   :  { %v6261_v43 = vpop.permute.xlu1 %6260 }
 0x3fe   :  { %7412 = vmatmul.mubr.msk.f32.vlgmr.msra.gmra.mrb[18].mxu0 %vm2846_vm12, %v7411_v18  ;;  %v5539_v22 = vpop.permute.xlu0 %5538 }
 0x3ff   :  { %5625 = vmatpush1.msra.mxu0 %v5542_v21  ;;  %v5544_v26 = vsel %vm3314_vm14, %v5537_v54, %v5539_v22  ;;  %5688 = vmatprep.mubr.f32.mxu0 %v8472_v25 }
 0x400   :  { %5797 = vmatprep.subr.mxu0 %v5785_v27  ;;  %7603 = vmatpush3.msra.mxu1 %v5544_v26 }
 0x401   :  { %v8857_v61 = vpop.permute.xlu1 %6742  ;;  %7605 = vmatmul.mubr.msk.f32.vlgmr.msra.gmra.mrb[20].mxu1 %vm2846_vm12, %v7411_v18  ;;  %7607 = vmatprep.subr.mxu1 %v8472_v25 }
 0x402   :  { %7413 = vmatmul.mubr.msk.f32.vlgmr.msra.gmra.mrb[20].mxu0 %vm2846_vm12, %v7411_v18  ;;  %v6259_v32 = vpop.permute.xlu0 %6258  ;;  %7609 = vmatprep.mubr.msk.f32.mxu1 %vm7846_vm0, %v8472_v25 }
 0x403   :  { %5798 = vmatpush1.msra.mxu0 %v5784_v31  ;;  %5861 = vmatprep.mubr.f32.mxu0 %v8472_v25  ;;  %v6266_v11 = vsel %vm252_vm3, %v6259_v32, %v6261_v43 }
 0x405   :  { %v6257_v35 = vpop.permute.xlu1 %6256 }
 0x406   :  { %7416 = vmatmul.mubr.msk.f32.vlgmr.msra.gmra.mrb[18].mxu0 %vm2846_vm12, %v7415_v33  ;;  %v5781_v36 = vpop.permute.xlu0 %5780  ;;  %v6264_v56 = vsel %vm252_vm3, %v8844_v15, %v6257_v35 }
 0x407   :  { %v5788_v37 = vsel %vm3559_vm1, %v5781_v36, %v5783_v5  ;;  %v5787_v39 = vsel %vm3559_vm1, %v8810_v45, %v5781_v36  ;;  %5932 = vmatprep.mubr.f32.mxu0 %v8472_v25 }
 0x408   :  { %5868 = vmatprep.subr.mxu0 %v5787_v39  ;;  %7608 = vmatpush3.msra.mxu1 %v5788_v37 }
 0x409   :  { %5869 = vmatpush1.msra.mxu0 %v5786_v41  ;;  %7610 = vmatmul.mubr.msk.f32.vlgmr.msra.gmra.mrb[22].mxu1 %vm2846_vm12, %v7415_v33  ;;  %v6505_v13 = vpop.permute.xlu1 %6504 }
 0x40a   :  { %7612 = vmatprep.subr.mxu1 %v8472_v25  ;;  %7417 = vmatmul.mubr.msk.f32.vlgmr.msra.gmra.mrb[20].mxu0 %vm2846_vm12, %v7415_v33  ;;  %v6497_v2 = vpop.permute.xlu0 %6496 }
 0x40b   :  { %7829 = vmatprep.subr.msk.mxu0 %vm8429_vm2, %v8723_v7  ;;  %7830 = vmatpush3.msk.msra.mxu1 %vm8485_vm10, %v8740_v51  ;;  %v6265_v51 = vsel %vm252_vm3, %v6257_v35, %v6259_v32  ;;  %v6507_v44 = vsel %vm4282_vm6, %v6497_v2, %v8840_v12  ;;  %vm9030_vm3 = vcmask 900096  }
 0x40c   :  { %7831 = vmatpush1.msk.msra.mxu0 %vm8403_vm11, %v8718_v0  ;;  %7614 = vmatprep.mubr.msk.f32.mxu1 %vm7846_vm0, %v8472_v25  ;;  %vm9031_vm4 = vmmov %vm9030_vm3 }
 0x40d   :  { %7832 = vmatprep.subr.msk.mxu0 %vm8444_vm7, %v8734_v20  ;;  %7617 = vmatprep.subr.mxu1 %v8472_v25  ;;  %v6501_v0 = vpop.permute.xlu1 %6500  ;;  %v8915_v20 = vld [vmem:[#allocation2] sm:$0xff]  ;;  %vm9032_vm11 = vmmov %vm9030_vm3 }
 0x40e   :  { %6083 = vmatprep.mubr.f32.mxu0 %v8472_v25  ;;  %7615 = vmatmul.mubr.msk.f32.vlgmr.msra.gmra.mrb[24].mxu1 %vm2846_vm12, %v7419_v6  ;;  %v6495_v28 = vpop.permute.xlu0 %6494  ;;  %v6508_v48 = vsel %vm4282_vm6, %v8840_v12, %v6501_v0  ;;  %vm9033_vm2 = vmmov %vm9030_vm3 }
 0x40f   :  { %7618 = vmatpush3.msra.mxu1 %v6266_v11  ;;  %7420 = vmatmul.mubr.msk.f32.vlgmr.msra.gmra.mrb[18].mxu0 %vm2846_vm12, %v7419_v6  ;;  %v6506_v24 = vsel %vm4282_vm6, %v6495_v28, %v6497_v2  ;;  %vm9034_vm7 = vmmov %vm9033_vm2 }
 0x410   :  { %7833 = vmatpush1.msk.msra.mxu0 %vm8465_vm15, %v8729_v17  ;;  %7619 = vmatprep.mubr.msk.f32.mxu1 %vm7846_vm0, %v8472_v25  ;;  %vm9035_vm15 = vcmask 891904  }
 0x411   :  { %6275 = vmatprep.subr.mxu0 %v6263_v40  ;;  %6154 = vmatprep.mubr.f32.mxu0 %v8472_v25  ;;  %v7427_v25 = vld [vmem:[%s9006_s5 + $0x30] sm:$0xff]  ;;  %v6747_v42 = vpop.permute.xlu1 %6746 }
 0x412   :  { %7620 = vmatmul.mubr.msk.f32.vlgmr.msra.gmra.mrb[26].mxu1 %vm2846_vm12, %v7423_v10  ;;  %v6503_v7 = vpop.permute.xlu0 %6502  ;;  %7622 = vmatprep.subr.mxu1 %v8915_v20 }
 0x413   :  { %7421 = vmatmul.mubr.msk.f32.vlgmr.msra.gmra.mrb[20].mxu0 %vm2846_vm12, %v7419_v6  ;;  %v6510_v17 = vsel %vm4282_vm6, %v6503_v7, %v6505_v13  ;;  %7624 = vmatprep.mubr.msk.f32.mxu1 %vm7846_vm0, %v8915_v20  ;;  %v6509_v45 = vsel %vm4282_vm6, %v6501_v0, %v6503_v7 }
 0x414   :  { %6276 = vmatpush1.msra.mxu0 %v6262_v23  ;;  %7623 = vmatpush3.msra.mxu1 %v6510_v17 }
 0x415   :  { %6346 = vmatprep.subr.mxu0 %v6265_v51  ;;  %6339 = vmatprep.mubr.f32.mxu0 %v8915_v20  ;;  %v6985_v57 = vpop.permute.xlu1 %6984 }
 0x416   :  { %7625 = vmatmul.mubr.msk.f32.vlgmr.msra.gmra.mrb[28].mxu1 %vm2846_vm12, %v7427_v25  ;;  %v6741_v30 = vpop.permute.xlu0 %6740  ;;  %7627 = vmatprep.subr.mxu1 %v8915_v20 }
 0x417   :  { %7424 = vmatmul.mubr.msk.f32.vlgmr.msra.gmra.mrb[18].mxu0 %vm2846_vm12, %v7423_v10  ;;  %7629 = vmatprep.mubr.msk.f32.mxu1 %vm7846_vm0, %v8915_v20  ;;  %v6751_v59 = vsel %vm9031_vm4, %v6741_v30, %v8857_v61 }
 0x418   :  { %6347 = vmatpush1.msra.mxu0 %v6264_v56  ;;  %6410 = vmatprep.mubr.f32.mxu0 %v8915_v20 }
 0x419   :  { %6519 = vmatprep.subr.mxu0 %v6507_v44  ;;  %v6983_v55 = vpop.permute.xlu1 %6982 }
 0x41a   :  { %v6739_v19 = vpop.permute.xlu0 %6738 }
 0x41b   :  { %7425 = vmatmul.mubr.msk.f32.vlgmr.msra.gmra.mrb[20].mxu0 %vm2846_vm12, %v7423_v10  ;;  %v6750_v54 = vsel %vm9032_vm11, %v6739_v19, %v6741_v30 }
 0x41c   :  { %6520 = vmatpush1.msra.mxu0 %v6506_v24  ;;  %6583 = vmatprep.mubr.f32.mxu0 %v8915_v20 }
 0x41d   :  { %6590 = vmatprep.subr.mxu0 %v6509_v45  ;;  %v6991_v1 = vpop.permute.xlu1 %6990 }
 0x41e   :  { %v6749_v47 = vpop.permute.xlu0 %6748 }
 0x41f   :  { %7428 = vmatmul.mubr.msk.f32.vlgmr.msra.gmra.mrb[18].mxu0 %vm2846_vm12, %v7427_v25  ;;  %v6754_v49 = vsel %vm9030_vm3, %v6747_v42, %v6749_v47 }
 0x420   :  { %6591 = vmatpush1.msra.mxu0 %v6508_v48  ;;  %7628 = vmatpush3.msra.mxu1 %v6754_v49 }
 0x421   :  { %6763 = vmatprep.subr.mxu0 %v6751_v59  ;;  %6654 = vmatprep.mubr.f32.mxu0 %v8915_v20 }
 0x422   :  { %7630 = vmatmul.mubr.msk.f32.vlgmr.msra.gmra.mrb[30].mxu1 %vm2846_vm12, %v7431_v50  ;;  %v6987_v53 = vpop.permute.xlu0 %6986  ;;  %7632 = vmatprep.subr.mxu1 %v8915_v20 }
 0x423   :  { %7429 = vmatmul.mubr.msk.f32.vlgmr.msra.gmra.mrb[20].mxu0 %vm2846_vm12, %v7427_v25  ;;  %7634 = vmatprep.mubr.msk.f32.mxu1 %vm7846_vm0, %v8915_v20  ;;  %v6995_v63 = vsel %vm9035_vm15, %v6985_v57, %v6987_v53  ;;  %vm9036_vm0 = vmmov %vm9035_vm15 }
 0x424   :  { %6764 = vmatpush1.msra.mxu0 %v6750_v54  ;;  %6827 = vmatprep.mubr.f32.mxu0 %v8915_v20  ;;  %v6994_v5 = vsel %vm9036_vm0, %v6983_v55, %v6985_v57  ;;  %vm9037_vm10 = vmmov %vm9036_vm0 }
 0x425   :  { %vm9038_vm8 = vmmov %vm9036_vm0 }
 0x426   :  { %v6745_v58 = vpop.permute.xlu0 %6744  ;;  %vm9039_vm13 = vmmov %vm9036_vm0 }
 0x427   :  { %7432 = vmatmul.mubr.msk.f32.vlgmr.msra.gmra.mrb[18].mxu0 %vm2846_vm12, %v7431_v50  ;;  %v6752_v60 = vsel %vm9033_vm2, %v8857_v61, %v6745_v58  ;;  %v6753_v62 = vsel %vm9034_vm7, %v6745_v58, %v6747_v42 }
 0x428   :  { %6834 = vmatprep.subr.mxu0 %v6753_v62  ;;  %6898 = vmatprep.mubr.f32.mxu0 %v8915_v20 }
 0x429   :  { %6835 = vmatpush1.msra.mxu0 %v6752_v60 }
 0x42a   :  { %7007 = vmatprep.subr.mxu0 %v6995_v63  ;;  %v6989_v3 = vpop.permute.xlu0 %6988 }
 0x42b   :  { %7433 = vmatmul.mubr.msk.f32.vlgmr.msra.gmra.mrb[20].mxu0 %vm2846_vm12, %v7431_v50  ;;  %v6997_v8 = vsel %vm9037_vm10, %v6989_v3, %v6991_v1  ;;  %v6996_v12 = vsel %vm9038_vm8, %v6987_v53, %v6989_v3 }
 0x42c   :  { %7008 = vmatpush1.msra.mxu0 %v6994_v5  ;;  %7071 = vmatprep.mubr.f32.mxu0 %v8915_v20 }
 0x42d   :  { %7078 = vmatprep.subr.mxu0 %v6997_v8 }
 0x42e   :  { %v6993_v29 = vpop.permute.xlu0 %6992  ;;  %v2751_v40 = vpop.permute.xlu1 %2750 }
 0x42f   :  { %7436 = vmatmul.mubr.msk.f32.vlgmr.msra.gmra.mrb[18].mxu0 %vm2846_vm12, %v7435_v9  ;;  %v6998_v14 = vsel %vm9039_vm13, %v6991_v1, %v6993_v29  ;;  %v2758_v0 = vadd.f32 %v8366_v34, %v2751_v40  ;;  %v2759_v7 = vadd.f32 %v8369_v38, %v2751_v40  ;;  %v2762_v23 = vadd.f32 %v8409_v4, %v2751_v40 }
 0x430   :  { %7079 = vmatpush1.msra.mxu0 %v6996_v12  ;;  %7142 = vmatprep.mubr.f32.mxu0 %v8915_v20  ;;  %v2760_v20 = vadd.f32 %v2751_v40, %v8381_v46  ;;  %v2761_v25 = vadd.f32 %v2751_v40, %v8391_v52 }
 0x431   :  { %7633 = vmatpush3.msra.mxu1 %v6998_v14  ;;  %v2778_v17 = vmul.f32 0.2, %v2758_v0  ;;  %v2779_v51 = vmul.f32 0.2, %v2759_v7  ;;  %vm2769_vm14 = vcmp.ge.f32.partialorder %v2759_v7, 0.0  ;;  %vm2772_vm6 = vcmp.ge.f32.partialorder %v2762_v23, 0.0 }
 0x432   :  { %7635 = vmatmul.mubr.msk.f32.vlgmr.msra.gmra.mrb[32].mxu1 %vm2846_vm12, %v7435_v9  ;;  %v2782_v45 = vmul.f32 0.2, %v2762_v23  ;;  %v2780_v34 = vmul.f32 0.2, %v2760_v20  ;;  %vm2770_vm1 = vcmp.ge.f32.partialorder %v2760_v20, 0.0  ;;  %vm2771_vm9 = vcmp.ge.f32.partialorder %v2761_v25, 0.0 }
 0x433   :  { %7437 = vmatmul.mubr.msk.f32.vlgmr.msra.gmra.mrb[20].mxu0 %vm2846_vm12, %v7435_v9  ;;  %vm2768_vm12 = vcmp.ge.f32.partialorder %v2758_v0, 0.0  ;;  %v2789_v38 = vsel %vm2769_vm14, %v2759_v7, %v2779_v51  ;;  %v2781_v46 = vmul.f32 0.2, %v2761_v25 }
 0x434   :  { %v2788_v19 = vsel %vm2768_vm12, %v2758_v0, %v2778_v17  ;;  %v2790_v54 = vsel %vm2770_vm1, %v2760_v20, %v2780_v34  ;;  %v2792_v58 = vsel %vm2772_vm6, %v2762_v23, %v2782_v45 }
 0x435   :  { %v2791_v62 = vsel %vm2771_vm9, %v2761_v25, %v2781_v46 }
 0x43f   :  { %v7228_v30 = vpop.permute.xlu0 %7227 }
 0x4c1   :  { %v5285_v15 = vpop.f32.mrb[22].mxu0 }
 0x4c2   :  { %v7596_v16 = vpop.f32.mrb[23].mxu0 }
 0x4cd   :  { %v5522_v18 = vpop.f32.mrb[24].mxu0 }
 0x4ce   :  { %v5523_v43 = vadd.f32 %v5522_v18, %v5285_v15  ;;  %v7601_v21 = vpop.f32.mrb[25].mxu0 }
 0x4d4   :  { %v5761_v22 = vpop.f32.mrb[20].mxu1 }
 0x4d5   :  { %v5769_v26 = vadd.f32 %v5761_v22, %v5523_v43  ;;  %v7606_v27 = vpop.f32.mrb[21].mxu1 }
 0x4dc   :  { %v6005_v61 = vpop.f32.mrb[22].mxu1 }
 0x4dd   :  { %v6013_v31 = vadd.f32 %v6005_v61, %v5769_v26  ;;  %v7611_v32 = vpop.f32.mrb[23].mxu1 }
 0x4e1   :  { %v6227_v33 = vpop.f32.mrb[24].mxu1 }
 0x4e2   :  { %v6235_v35 = vadd.f32 %v6227_v33, %v6013_v31  ;;  %v7616_v36 = vpop.f32.mrb[25].mxu1 }
 0x4e5   :  { %v6483_v37 = vpop.f32.mrb[26].mxu1 }
 0x4e6   :  { %v6491_v39 = vadd.f32 %v6483_v37, %v6235_v35  ;;  %v7621_v41 = vpop.f32.mrb[27].mxu1 }
 0x4e9   :  { %v6727_v2 = vpop.f32.mrb[28].mxu1 }
 0x4ea   :  { %v6735_v6 = vadd.f32 %v6727_v2, %v6491_v39  ;;  %v7626_v13 = vpop.f32.mrb[29].mxu1 }
 0x4f5   :  { %v6971_v11 = vpop.f32.mrb[30].mxu1 }
 0x4f6   :  { %v6979_v28 = vadd.f32 %v6971_v11, %v6735_v6  ;;  %v7631_v10 = vpop.f32.mrb[31].mxu1 }
 0x502   :  { %v7073_v56 = vpop.f32.mrb[18].mxu0 }
 0x503   :  { %v7230_v42 = vadd.f32 %v7228_v30, %v7073_v56  ;;  %v7075_v44 = vpop.f32.mrb[19].mxu0 }
 0x504   :  { %v7231_v24 = vadd.f32 %v7228_v30, %v7075_v44 }
 0x505   :  { %v7235_v57 = vadd.f32 %v7230_v42, %v2788_v19  ;;  %v7215_v47 = vpop.f32.mrb[32].mxu1 }
 0x506   :  { %v7236_v4 = vadd.f32 %v7231_v24, %v2789_v38  ;;  %v7223_v48 = vadd.f32 %v7215_v47, %v6979_v28  ;;  %v7144_v52 = vpop.f32.mrb[20].mxu0  ;;  %v7636_v49 = vpop.f32.mrb[33].mxu1 }
 0x507   :  { %7240 = vst [vmem:[%s9007_s7] sm:$0xff] %v7235_v57  ;;  %v7232_v50 = vadd.f32 %v7228_v30, %v7144_v52  ;;  %v7146_v59 = vpop.f32.mrb[21].mxu0 }
 0x508   :  { %7241 = vst [vmem:[%s9007_s7 + $0x8] sm:$0xff] %v7236_v4  ;;  %v7234_v53 = vadd.f32 %v7228_v30, %v7223_v48  ;;  %v7233_v55 = vadd.f32 %v7228_v30, %v7146_v59 }
 0x509   :  { %v7237_v60 = vadd.f32 %v7232_v50, %v2790_v54 }
 0x50a   :  { %v7239_v63 = vadd.f32 %v7234_v53, %v2792_v58  ;;  %v7238_v1 = vadd.f32 %v7233_v55, %v2791_v62 }
 0x50b   :  { %7242 = vst [vmem:[%s9007_s7 + $0x10] sm:$0xff] %v7237_v60 }
 0x50c   :  { %7244 = vst [vmem:[%s9007_s7 + $0x20] sm:$0xff] %v7239_v63  ;;  %7243 = vst [vmem:[%s9007_s7 + $0x18] sm:$0xff] %v7238_v1 }

</bundles_post_ra>
